<compile_context>
chip_gen: v7x
topology: tpu7x:2x2x1
jax: 0.10.0
libtpu: 0.0.40
codegen_flags: <defaults>
</compile_context>

<pallas_src>
import functools

import jax
import jax.numpy as jnp
from jax.experimental import pallas as pl
from jax.experimental.pallas import tpu as pltpu

NEG_SLOPE = 0.01      # F.leaky_relu default
BN_EPS = 1e-5         # nn.BatchNorm1d default

EDGE_TYPES = (
    ('cdr3b', 'binds_to', 'tra_peptide'),
    ('cdr3b', 'binds_to', 'trb_peptide'),
    ('tra_peptide', 'rev_binds_to', 'cdr3b'),
    ('trb_peptide', 'rev_binds_to', 'cdr3b'),
)
NODE_TYPES = ('cdr3b', 'tra_peptide', 'trb_peptide')

# Tile targets (bf16 inputs): double-buffered x/w tiles + f32 acc ~ 2 MiB << 64 MiB (v7x).
TM, TN, TK = 256, 256, 512
VMEM_LIMIT_BYTES = 32 * 1024 * 1024   # explicit; safe on v5e/v6e/v7x


# --------------------------------------------------------------------------
# small helpers
# --------------------------------------------------------------------------
def _round_up(x, m):
    return ((x + m - 1) // m) * m


def _pad_dim(dim, target, align):
    """Return (padded_dim, tile) with tile | padded_dim and tile aligned/full."""
    dp = _round_up(dim, align)
    if dp <= target:
        return dp, dp
    return _round_up(dp, target), target


def _pad2d(a, rows, cols):
    if a.shape == (rows, cols):
        return a
    return jnp.pad(a, ((0, rows - a.shape[0]), (0, cols - a.shape[1])))


def _activate(acc, act):
    if act == "leaky_relu":
        return jnp.where(acc > 0, acc, NEG_SLOPE * acc)
    if act == "relu":
        return jnp.maximum(acc, 0.0)
    return acc


# --------------------------------------------------------------------------
# Kernel 1: tiled  out = act(x @ w [+ b])   with f32 VMEM accumulator over K
# --------------------------------------------------------------------------
def _tiled_linear_kernel(*refs, act, has_bias):
    if has_bias:
        x_ref, w_ref, b_ref, o_ref, acc_ref = refs
    else:
        x_ref, w_ref, o_ref, acc_ref = refs
        b_ref = None
    k = pl.program_id(2)

    @pl.when(k == 0)
    def _init():
        acc_ref[...] = jnp.zeros_like(acc_ref)

    acc_ref[...] += jnp.dot(x_ref[...], w_ref[...],
                            preferred_element_type=jnp.float32)

    @pl.when(k == pl.num_programs(2) - 1)
    def _fin():
        acc = acc_ref[...]
        if has_bias:
            acc = acc + b_ref[...]
        o_ref[...] = _activate(acc, act).astype(o_ref.dtype)


def pallas_linear(x, w, b=None, act="none", out_dtype=jnp.bfloat16,
                  tm=TM, tn=TN, tk=TK):
    """out = act(x @ w [+ b]).  x:[M,K], w:[K,N], b:[N]|None. bf16 MXU, f32 accum."""
    M, K = x.shape
    K2, N = w.shape
    assert K2 == K
    Mp, tm = _pad_dim(M, tm, 8)
    Np, tn = _pad_dim(N, tn, 128)
    Kp, tk = _pad_dim(K, tk, 128)

    xp = _pad2d(x.astype(jnp.bfloat16), Mp, Kp)
    wp = _pad2d(w.astype(jnp.bfloat16), Kp, Np)
    inputs = [xp, wp]
    in_specs = [
        pl.BlockSpec((tm, tk), lambda m, n, k: (m, k)),
        pl.BlockSpec((tk, tn), lambda m, n, k: (k, n)),
    ]
    has_bias = b is not None
    if has_bias:
        bp = _pad2d(jnp.asarray(b, jnp.float32).reshape(1, N), 1, Np)
        inputs.append(bp)
        in_specs.append(pl.BlockSpec((1, tn), lambda m, n, k: (0, n)))

    kernel = functools.partial(_tiled_linear_kernel, act=act, has_bias=has_bias)
    out_bytes = Mp * Np * jnp.dtype(out_dtype).itemsize
    cost = pl.CostEstimate(
        flops=int(2 * Mp * Np * Kp),
        transcendentals=0,
        bytes_accessed=int((Mp * Kp + Kp * Np) * 2 + Np * 4 + out_bytes),
    )
    out = pl.pallas_call(
        kernel,
        out_shape=jax.ShapeDtypeStruct((Mp, Np), out_dtype),
        grid=(Mp // tm, Np // tn, Kp // tk),
        in_specs=in_specs,
        out_specs=pl.BlockSpec((tm, tn), lambda m, n, k: (m, n)),
        scratch_shapes=[pltpu.VMEM((tm, tn), jnp.float32)],
        compiler_params=pltpu.CompilerParams(
            dimension_semantics=("parallel", "parallel", "arbitrary"),
            vmem_limit_bytes=VMEM_LIMIT_BYTES),
        cost_estimate=cost,
    )(*inputs)
    if Mp != M or Np != N:
        out = out[:M, :N]
    return out


# --------------------------------------------------------------------------
# Kernel 2: fused  out = act(sum_i x_i @ w_i  [+ b])   (K_i untiled, N/M tiled)
# Used for HeteroConv sum over edge types (incl. the adjacency SpMM operand) and
# for the split-W1 decoder lin1 (kills the per-forward concats).
# --------------------------------------------------------------------------
def _fused_parts_kernel(*refs, n_parts, act, has_bias):
    o_ref = refs[-1]
    acc = jnp.dot(refs[0][...], refs[1][...], preferred_element_type=jnp.float32)
    for i in range(1, n_parts):
        acc = acc + jnp.dot(refs[2 * i][...], refs[2 * i + 1][...],
                            preferred_element_type=jnp.float32)
    if has_bias:
        acc = acc + refs[2 * n_parts][...]
    o_ref[...] = _activate(acc, act).astype(o_ref.dtype)


def pallas_fused_linear(parts, b=None, act="none", out_dtype=jnp.bfloat16,
                        tm=TM, tn=TN):
    """out = act(sum_i x_i @ w_i [+ b]).  parts: list of (x_i [M,K_i], w_i [K_i,N])."""
    M = parts[0][0].shape[0]
    N = parts[0][1].shape[1]
    Mp, tm = _pad_dim(M, tm, 8)
    Np, tn = _pad_dim(N, tn, 128)

    inputs, in_specs = [], []
    flops = 0
    bytes_accessed = 0
    for (x, w) in parts:
        Kx = x.shape[1]
        assert x.shape[0] == M and w.shape == (Kx, N)
        Kp = _round_up(Kx, 128)
        inputs.append(_pad2d(x.astype(jnp.bfloat16), Mp, Kp))
        inputs.append(_pad2d(w.astype(jnp.bfloat16), Kp, Np))
        in_specs.append(pl.BlockSpec((tm, Kp), lambda m, n: (m, 0)))
        in_specs.append(pl.BlockSpec((Kp, tn), lambda m, n: (0, n)))
        flops += 2 * Mp * Np * Kp
        bytes_accessed += (Mp * Kp + Kp * Np) * 2
    has_bias = b is not None
    if has_bias:
        bp = _pad2d(jnp.asarray(b, jnp.float32).reshape(1, N), 1, Np)
        inputs.append(bp)
        in_specs.append(pl.BlockSpec((1, tn), lambda m, n: (0, n)))
        bytes_accessed += Np * 4
    bytes_accessed += Mp * Np * jnp.dtype(out_dtype).itemsize

    kernel = functools.partial(_fused_parts_kernel, n_parts=len(parts),
                               act=act, has_bias=has_bias)
    out = pl.pallas_call(
        kernel,
        out_shape=jax.ShapeDtypeStruct((Mp, Np), out_dtype),
        grid=(Mp // tm, Np // tn),
        in_specs=in_specs,
        out_specs=pl.BlockSpec((tm, tn), lambda m, n: (m, n)),
        compiler_params=pltpu.CompilerParams(
            dimension_semantics=("parallel", "parallel"),
            vmem_limit_bytes=VMEM_LIMIT_BYTES),
        cost_estimate=pl.CostEstimate(flops=int(flops), transcendentals=0,
                                      bytes_accessed=int(bytes_accessed)),
    )(*inputs)
    if Mp != M or Np != N:
        out = out[:M, :N]
    return out


# --------------------------------------------------------------------------
# Dense normalized adjacency (mean aggregation of SAGEConv)
# --------------------------------------------------------------------------
def mean_adjacency(edge_index, n_src, n_dst):
    src, dst = edge_index[0], edge_index[1]
    a = jnp.zeros((n_dst, n_src), jnp.float32).at[dst, src].add(1.0)
    deg = a.sum(axis=1, keepdims=True)
    # zero in-degree -> zero row (matches PyG scatter-mean); duplicates counted.
    return (a / jnp.maximum(deg, 1.0)).astype(jnp.bfloat16)


# --------------------------------------------------------------------------
# Parameter init (deterministic, synthetic — weights stored as [in, out])
# --------------------------------------------------------------------------
def init_params(key, feat_dims, hidden=64, num_layers=3):
    params = {'gnn': []}
    dims = dict(feat_dims)
    for _ in range(num_layers):
        layer = {}
        for et in EDGE_TYPES:
            src, _, dst = et
            key, k1, k2, k3 = jax.random.split(key, 4)
            layer[et] = {
                # SAGEConv: lin_l (mean-aggregated src messages, with bias),
                #           lin_r (dst/root features, no bias)
                'W_l': 0.1 * jax.random.normal(k1, (dims[src], hidden), jnp.float32),
                'b_l': 0.1 * jax.random.normal(k2, (hidden,), jnp.float32),
                'W_r': 0.1 * jax.random.normal(k3, (dims[dst], hidden), jnp.float32),
            }
        params['gnn'].append(layer)
        dims = {nt: hidden for nt in NODE_TYPES}

    def lin(k, fin, fout):
        ka, kb = jax.random.split(k)
        return (0.1 * jax.random.normal(ka, (fin, fout), jnp.float32),
                0.1 * jax.random.normal(kb, (fout,), jnp.float32))

    key, ka, kb, kc, kd = jax.random.split(key, 5)
    W1, b1 = lin(ka, 2 * hidden, 512)
    W2, b2 = lin(kb, 512, 256)
    W3a, b3a = lin(kc, 256, 1)
    W3b, b3b = lin(kd, 256, 1)
    bn1 = {'gamma': jnp.ones(512), 'beta': jnp.zeros(512),
           'mean': jnp.zeros(512), 'var': jnp.ones(512)}
    bn2 = {'gamma': jnp.ones(256), 'beta': jnp.zeros(256),
           'mean': jnp.zeros(256), 'var': jnp.ones(256)}
    params['mlp'] = {'W1': W1, 'b1': b1, 'bn1': bn1,
                     'W2': W2, 'b2': b2, 'bn2': bn2,
                     'W3a': W3a, 'b3a': b3a, 'W3b': W3b, 'b3b': b3b}
    return params


def fold_bn(W, b, bn):
    """Fold inference-mode BatchNorm1d into the preceding Linear (exact at eval)."""
    scale = bn['gamma'] / jnp.sqrt(bn['var'] + BN_EPS)
    return W * scale[None, :], (b - bn['mean']) * scale + bn['beta']


def prepare_params(params):
    """Hoisted, run-once parameter prep: BN folding, per-dst weight sums, W1 split,
    packed N=128 head, bf16 weight casts. Nothing here runs per forward."""
    hidden = params['gnn'][0][EDGE_TYPES[0]]['W_l'].shape[1]
    prep = {'gnn': []}
    for layer in params['gnn']:
        W_l = {et: layer[et]['W_l'].astype(jnp.bfloat16) for et in EDGE_TYPES}
        W_r_sum, b_sum = {}, {}
        for dst in NODE_TYPES:
            ets = [et for et in EDGE_TYPES if et[2] == dst]
            W_r_sum[dst] = sum(layer[et]['W_r'] for et in ets).astype(jnp.bfloat16)
            b_sum[dst] = sum(layer[et]['b_l'] for et in ets).astype(jnp.float32)
        prep['gnn'].append({'W_l': W_l, 'W_r_sum': W_r_sum, 'b_sum': b_sum})

    mlp = params['mlp']
    W1, b1 = fold_bn(mlp['W1'], mlp['b1'], mlp['bn1'])   # f32 fold, then bf16 cast
    W2, b2 = fold_bn(mlp['W2'], mlp['b2'], mlp['bn2'])
    W3pad = jnp.zeros((256, 128), jnp.float32)
    W3pad = W3pad.at[:, 0].set(mlp['W3a'][:, 0]).at[:, 1].set(mlp['W3b'][:, 0])
    b3pad = jnp.zeros((128,), jnp.float32)
    b3pad = b3pad.at[0].set(mlp['b3a'][0]).at[1].set(mlp['b3b'][0])
    prep['mlp'] = {
        'W1c': W1[:hidden].astype(jnp.bfloat16),    # acts on the cdr3b embedding half
        'W1p': W1[hidden:].astype(jnp.bfloat16),    # acts on the peptide embedding half
        'b1': b1.astype(jnp.float32),
        'W2': W2.astype(jnp.bfloat16), 'b2': b2.astype(jnp.float32),
        'W3pad': W3pad.astype(jnp.bfloat16), 'b3pad': b3pad,
    }
    return prep


# --------------------------------------------------------------------------
# HeteroTCR forward
# --------------------------------------------------------------------------
def hetero_tcr_forward(prep, x_dict, edge_index_dict, edge_index_a, edge_index_b):
    n = {nt: x_dict[nt].shape[0] for nt in NODE_TYPES}
    adjs = {et: mean_adjacency(ei, n[et[0]], n[et[2]])
            for et, ei in edge_index_dict.items()}
    z = {nt: x_dict[nt].astype(jnp.bfloat16) for nt in NODE_TYPES}

    # ---- encoder: num_layers x HeteroConv(SAGEConv, sum aggr) + leaky_relu ----
    for layer in prep['gnn']:
        # lin_l reassociated:  lin_l(mean_agg(x_src)) = adj @ (x_src @ W_l) + b_l
        h = {et: pallas_linear(z[et[0]], layer['W_l'][et], None, act="none",
                               out_dtype=jnp.bfloat16)
             for et in EDGE_TYPES}
        new_z = {}
        for dst in NODE_TYPES:
            ets = [et for et in EDGE_TYPES if et[2] == dst]
            parts = [(adjs[et], h[et]) for et in ets]
            parts.append((z[dst], layer['W_r_sum'][dst]))       # root term (W_r pre-summed)
            new_z[dst] = pallas_fused_linear(parts, layer['b_sum'][dst],
                                             act="leaky_relu", out_dtype=jnp.bfloat16)
        z = new_z

    # ---- decoder: shared MLP on the stacked TRA/TRB pair batch (eval mode) ----
    mlp = prep['mlp']
    ep_a = edge_index_a.shape[1]
    idx_c = jnp.concatenate([edge_index_a[0], edge_index_b[0]])
    xc = z['cdr3b'][idx_c]                                       # (Ep_a+Ep_b, hidden)
    xp = jnp.concatenate([z['tra_peptide'][edge_index_a[1]],
                          z['trb_peptide'][edge_index_b[1]]], axis=0)
    # lin1 + folded bn1 + relu (+ dropout=id), feature concat fused away via split W1
    h1 = pallas_fused_linear([(xc, mlp['W1c']), (xp, mlp['W1p'])], mlp['b1'],
                             act="relu", out_dtype=jnp.bfloat16)
    # lin2 + folded bn2 (+ dropout=id) + relu
    h2 = pallas_linear(h1, mlp['W2'], mlp['b2'], act="relu", out_dtype=jnp.bfloat16)
    # both N=1 heads packed into one lane-dense 128-wide projection
    heads = pallas_linear(h2, mlp['W3pad'], mlp['b3pad'], act="none",
                          out_dtype=jnp.float32)
    out_tra = heads[:ep_a, 0:1]
    out_trb = heads[ep_a:, 1:2]
    return out_tra, out_trb


# --------------------------------------------------------------------------
if __name__ == "__main__":
    key = jax.random.PRNGKey(0)
    hidden = 64
    num_nodes = {'cdr3b': 16, 'tra_peptide': 8, 'trb_peptide': 8}
    feat_dims = {'cdr3b': 20, 'tra_peptide': 12, 'trb_peptide': 12}

    keys = jax.random.split(key, 10)
    x_dict = {nt: jax.random.normal(keys[i], (num_nodes[nt], feat_dims[nt]), jnp.float32)
              for i, nt in enumerate(NODE_TYPES)}

    E = 24
    ei_ca = jnp.stack([jax.random.randint(keys[3], (E,), 0, num_nodes['cdr3b']),
                       jax.random.randint(keys[4], (E,), 0, num_nodes['tra_peptide'])]
                      ).astype(jnp.int32)
    ei_cb = jnp.stack([jax.random.randint(keys[5], (E,), 0, num_nodes['cdr3b']),
                       jax.random.randint(keys[6], (E,), 0, num_nodes['trb_peptide'])]
                      ).astype(jnp.int32)
    edge_index_dict = {
        ('cdr3b', 'binds_to', 'tra_peptide'): ei_ca,
        ('cdr3b', 'binds_to', 'trb_peptide'): ei_cb,
        ('tra_peptide', 'rev_binds_to', 'cdr3b'): ei_ca[::-1],
        ('trb_peptide', 'rev_binds_to', 'cdr3b'): ei_cb[::-1],
    }

    Ep = 8
    edge_index_a = jnp.stack([jax.random.randint(keys[7], (Ep,), 0, num_nodes['cdr3b']),
                              jax.random.randint(keys[8], (Ep,), 0, num_nodes['tra_peptide'])]
                             ).astype(jnp.int32)
    edge_index_b = jnp.stack([jax.random.randint(keys[9], (Ep,), 0, num_nodes['cdr3b']),
                              jax.random.randint(keys[7], (Ep,), 0, num_nodes['trb_peptide'])]
                             ).astype(jnp.int32)

    params = init_params(jax.random.PRNGKey(42), feat_dims, hidden=hidden, num_layers=3)
    prep = prepare_params(params)          # run-once: BN fold, bf16 casts, weight packing

    fwd = jax.jit(hetero_tcr_forward)
    out_tra, out_trb = fwd(prep, x_dict, edge_index_dict, edge_index_a, edge_index_b)
    jax.block_until_ready((out_tra, out_trb))
    assert out_tra.shape == (Ep, 1) and out_trb.shape == (Ep, 1)
    assert out_tra.dtype == jnp.float32 and out_trb.dtype == jnp.float32
    print("KERNEL_OK")
</pallas_src>

<mosaic_0001>
module attributes {stable_mosaic.version = 11 : i64} {
  func.func @_tiled_linear_kernel(%arg0: i32, %arg1: i32, %arg2: i32, %arg3: memref<16x128xbf16, #tpu.memory_space<vmem>>, %arg4: memref<128x128xbf16, #tpu.memory_space<vmem>>, %arg5: memref<16x128xbf16, #tpu.memory_space<vmem>>, %arg6: memref<16x128xf32, #tpu.memory_space<vmem>>) attributes {dimension_semantics = [#tpu.dimension_semantics<parallel>, #tpu.dimension_semantics<parallel>, #tpu.dimension_semantics<arbitrary>], iteration_bounds = array<i64: 1, 1, 1>, scalar_prefetch = 0 : i64, scratch_operands = 1 : i64, tpu.core_type = #tpu.core_type<tc>, window_params = [{transform_indices = @transform_0, window_bounds = array<i64: 16, 128>}, {transform_indices = @transform_1, window_bounds = array<i64: 128, 128>}, {transform_indices = @transform_2, window_bounds = array<i64: 16, 128>}]} {
    %c0_i32 = arith.constant 0 : i32
    %0 = arith.cmpi eq, %arg2, %c0_i32 : i32
    %1 = arith.extui %0 : i1 to i32
    %c0_i32_0 = arith.constant 0 : i32
    %2 = arith.cmpi ne, %1, %c0_i32_0 : i32
    scf.if %2 {
      %cst_10 = arith.constant 0.000000e+00 : f32
      %12 = vector.broadcast %cst_10 : f32 to vector<16x128xf32>
      %c0_11 = arith.constant 0 : index
      %c0_12 = arith.constant 0 : index
      %13 = vector.load %arg6[%c0_11, %c0_12] : memref<16x128xf32, #tpu.memory_space<vmem>>, vector<16x128xf32>
      tpu.vector_store %arg6[%c0_11, %c0_12], %12 {strides = array<i32>} : memref<16x128xf32, #tpu.memory_space<vmem>>, vector<16x128xf32>,
    } else {
    }
    %c0 = arith.constant 0 : index
    %c0_1 = arith.constant 0 : index
    %3 = vector.load %arg6[%c0, %c0_1] : memref<16x128xf32, #tpu.memory_space<vmem>>, vector<16x128xf32>
    %c0_2 = arith.constant 0 : index
    %c0_3 = arith.constant 0 : index
    %4 = vector.load %arg3[%c0_2, %c0_3] : memref<16x128xbf16, #tpu.memory_space<vmem>>, vector<16x128xbf16>
    %c0_4 = arith.constant 0 : index
    %c0_5 = arith.constant 0 : index
    %5 = vector.load %arg4[%c0_4, %c0_5] : memref<128x128xbf16, #tpu.memory_space<vmem>>, vector<128x128xbf16>
    %cst = arith.constant dense<0.000000e+00> : vector<16x128xf32>
    %6 = tpu.matmul %4, %5, %cst {dimension_numbers = #tpu.dot_dimension_numbers<[1], [0], [0], [1], [0, 0, 1, 1], [], []>} : vector<16x128xbf16>, vector<128x128xbf16>, vector<16x128xf32> -> vector<16x128xf32>
    %7 = arith.addf %3, %6 : vector<16x128xf32>
    %c0_6 = arith.constant 0 : index
    %c0_7 = arith.constant 0 : index
    %8 = vector.load %arg6[%c0_6, %c0_7] : memref<16x128xf32, #tpu.memory_space<vmem>>, vector<16x128xf32>
    tpu.vector_store %arg6[%c0_6, %c0_7], %7 {strides = array<i32>} : memref<16x128xf32, #tpu.memory_space<vmem>>, vector<16x128xf32>,
    %c0_i32_8 = arith.constant 0 : i32
    %9 = arith.cmpi eq, %arg2, %c0_i32_8 : i32
    %10 = arith.extui %9 : i1 to i32
    %c0_i32_9 = arith.constant 0 : i32
    %11 = arith.cmpi ne, %10, %c0_i32_9 : i32
    scf.if %11 {
      %c0_10 = arith.constant 0 : index
      %c0_11 = arith.constant 0 : index
      %12 = vector.load %arg6[%c0_10, %c0_11] : memref<16x128xf32, #tpu.memory_space<vmem>>, vector<16x128xf32>
      %13 = arith.truncf %12 : vector<16x128xf32> to vector<16x128xbf16>
      %c0_12 = arith.constant 0 : index
      %c0_13 = arith.constant 0 : index
      %14 = vector.load %arg5[%c0_12, %c0_13] : memref<16x128xbf16, #tpu.memory_space<vmem>>, vector<16x128xbf16>
      tpu.vector_store %arg5[%c0_12, %c0_13], %13 {strides = array<i32>} : memref<16x128xbf16, #tpu.memory_space<vmem>>, vector<16x128xbf16>,
    } else {
    }
    return
  }
  func.func @transform_0(%arg0: i32, %arg1: i32, %arg2: i32) -> (i32, i32) {
    %c0_i32 = arith.constant 0 : i32
    return %arg0, %arg2 : i32, i32
  }
  func.func @transform_1(%arg0: i32, %arg1: i32, %arg2: i32) -> (i32, i32) {
    %c0_i32 = arith.constant 0 : i32
    return %arg2, %arg1 : i32, i32
  }
  func.func @transform_2(%arg0: i32, %arg1: i32, %arg2: i32) -> (i32, i32) {
    %c0_i32 = arith.constant 0 : i32
    return %arg0, %arg1 : i32, i32
  }
}

module attributes {stable_mosaic.version = 11 : i64} {
  func.func @_tiled_linear_kernel(%arg0: i32, %arg1: i32, %arg2: i32, %arg3: memref<8x128xbf16, #tpu.memory_space<vmem>>, %arg4: memref<128x128xbf16, #tpu.memory_space<vmem>>, %arg5: memref<8x128xbf16, #tpu.memory_space<vmem>>, %arg6: memref<8x128xf32, #tpu.memory_space<vmem>>) attributes {dimension_semantics = [#tpu.dimension_semantics<parallel>, #tpu.dimension_semantics<parallel>, #tpu.dimension_semantics<arbitrary>], iteration_bounds = array<i64: 1, 1, 1>, scalar_prefetch = 0 : i64, scratch_operands = 1 : i64, tpu.core_type = #tpu.core_type<tc>, window_params = [{transform_indices = @transform_0, window_bounds = array<i64: 8, 128>}, {transform_indices = @transform_1, window_bounds = array<i64: 128, 128>}, {transform_indices = @transform_2, window_bounds = array<i64: 8, 128>}]} {
    %c0_i32 = arith.constant 0 : i32
    %0 = arith.cmpi eq, %arg2, %c0_i32 : i32
    %1 = arith.extui %0 : i1 to i32
    %c0_i32_0 = arith.constant 0 : i32
    %2 = arith.cmpi ne, %1, %c0_i32_0 : i32
    scf.if %2 {
      %cst_10 = arith.constant 0.000000e+00 : f32
      %12 = vector.broadcast %cst_10 : f32 to vector<8x128xf32>
      %c0_11 = arith.constant 0 : index
      %c0_12 = arith.constant 0 : index
      %13 = vector.load %arg6[%c0_11, %c0_12] : memref<8x128xf32, #tpu.memory_space<vmem>>, vector<8x128xf32>
      tpu.vector_store %arg6[%c0_11, %c0_12], %12 {strides = array<i32>} : memref<8x128xf32, #tpu.memory_space<vmem>>, vector<8x128xf32>,
    } else {
    }
    %c0 = arith.constant 0 : index
    %c0_1 = arith.constant 0 : index
    %3 = vector.load %arg6[%c0, %c0_1] : memref<8x128xf32, #tpu.memory_space<vmem>>, vector<8x128xf32>
    %c0_2 = arith.constant 0 : index
    %c0_3 = arith.constant 0 : index
    %4 = vector.load %arg3[%c0_2, %c0_3] : memref<8x128xbf16, #tpu.memory_space<vmem>>, vector<8x128xbf16>
    %c0_4 = arith.constant 0 : index
    %c0_5 = arith.constant 0 : index
    %5 = vector.load %arg4[%c0_4, %c0_5] : memref<128x128xbf16, #tpu.memory_space<vmem>>, vector<128x128xbf16>
    %cst = arith.constant dense<0.000000e+00> : vector<8x128xf32>
    %6 = tpu.matmul %4, %5, %cst {dimension_numbers = #tpu.dot_dimension_numbers<[1], [0], [0], [1], [0, 0, 1, 1], [], []>} : vector<8x128xbf16>, vector<128x128xbf16>, vector<8x128xf32> -> vector<8x128xf32>
    %7 = arith.addf %3, %6 : vector<8x128xf32>
    %c0_6 = arith.constant 0 : index
    %c0_7 = arith.constant 0 : index
    %8 = vector.load %arg6[%c0_6, %c0_7] : memref<8x128xf32, #tpu.memory_space<vmem>>, vector<8x128xf32>
    tpu.vector_store %arg6[%c0_6, %c0_7], %7 {strides = array<i32>} : memref<8x128xf32, #tpu.memory_space<vmem>>, vector<8x128xf32>,
    %c0_i32_8 = arith.constant 0 : i32
    %9 = arith.cmpi eq, %arg2, %c0_i32_8 : i32
    %10 = arith.extui %9 : i1 to i32
    %c0_i32_9 = arith.constant 0 : i32
    %11 = arith.cmpi ne, %10, %c0_i32_9 : i32
    scf.if %11 {
      %c0_10 = arith.constant 0 : index
      %c0_11 = arith.constant 0 : index
      %12 = vector.load %arg6[%c0_10, %c0_11] : memref<8x128xf32, #tpu.memory_space<vmem>>, vector<8x128xf32>
      %13 = arith.truncf %12 : vector<8x128xf32> to vector<8x128xbf16>
      %c0_12 = arith.constant 0 : index
      %c0_13 = arith.constant 0 : index
      %14 = vector.load %arg5[%c0_12, %c0_13] : memref<8x128xbf16, #tpu.memory_space<vmem>>, vector<8x128xbf16>
      tpu.vector_store %arg5[%c0_12, %c0_13], %13 {strides = array<i32>} : memref<8x128xbf16, #tpu.memory_space<vmem>>, vector<8x128xbf16>,
    } else {
    }
    return
  }
  func.func @transform_0(%arg0: i32, %arg1: i32, %arg2: i32) -> (i32, i32) {
    %c0_i32 = arith.constant 0 : i32
    return %arg0, %arg2 : i32, i32
  }
  func.func @transform_1(%arg0: i32, %arg1: i32, %arg2: i32) -> (i32, i32) {
    %c0_i32 = arith.constant 0 : i32
    return %arg2, %arg1 : i32, i32
  }
  func.func @transform_2(%arg0: i32, %arg1: i32, %arg2: i32) -> (i32, i32) {
    %c0_i32 = arith.constant 0 : i32
    return %arg0, %arg1 : i32, i32
  }
}

module attributes {stable_mosaic.version = 11 : i64} {
  func.func @_fused_parts_kernel(%arg0: i32, %arg1: i32, %arg2: memref<16x128xbf16, #tpu.memory_space<vmem>>, %arg3: memref<128x128xbf16, #tpu.memory_space<vmem>>, %arg4: memref<16x128xbf16, #tpu.memory_space<vmem>>, %arg5: memref<128x128xbf16, #tpu.memory_space<vmem>>, %arg6: memref<16x128xbf16, #tpu.memory_space<vmem>>, %arg7: memref<128x128xbf16, #tpu.memory_space<vmem>>, %arg8: memref<1x128xf32, #tpu.memory_space<vmem>>, %arg9: memref<16x128xbf16, #tpu.memory_space<vmem>>) attributes {dimension_semantics = [#tpu.dimension_semantics<parallel>, #tpu.dimension_semantics<parallel>], iteration_bounds = array<i64: 1, 1>, scalar_prefetch = 0 : i64, scratch_operands = 0 : i64, tpu.core_type = #tpu.core_type<tc>, window_params = [{transform_indices = @transform_0, window_bounds = array<i64: 16, 128>}, {transform_indices = @transform_1, window_bounds = array<i64: 128, 128>}, {transform_indices = @transform_2, window_bounds = array<i64: 16, 128>}, {transform_indices = @transform_3, window_bounds = array<i64: 128, 128>}, {transform_indices = @transform_4, window_bounds = array<i64: 16, 128>}, {transform_indices = @transform_5, window_bounds = array<i64: 128, 128>}, {transform_indices = @transform_6, window_bounds = array<i64: 1, 128>}, {transform_indices = @transform_7, window_bounds = array<i64: 16, 128>}]} {
    %c0 = arith.constant 0 : index
    %c0_0 = arith.constant 0 : index
    %0 = vector.load %arg2[%c0, %c0_0] : memref<16x128xbf16, #tpu.memory_space<vmem>>, vector<16x128xbf16>
    %c0_1 = arith.constant 0 : index
    %c0_2 = arith.constant 0 : index
    %1 = vector.load %arg3[%c0_1, %c0_2] : memref<128x128xbf16, #tpu.memory_space<vmem>>, vector<128x128xbf16>
    %cst = arith.constant dense<0.000000e+00> : vector<16x128xf32>
    %2 = tpu.matmul %0, %1, %cst {dimension_numbers = #tpu.dot_dimension_numbers<[1], [0], [0], [1], [0, 0, 1, 1], [], []>} : vector<16x128xbf16>, vector<128x128xbf16>, vector<16x128xf32> -> vector<16x128xf32>
    %c0_3 = arith.constant 0 : index
    %c0_4 = arith.constant 0 : index
    %3 = vector.load %arg4[%c0_3, %c0_4] : memref<16x128xbf16, #tpu.memory_space<vmem>>, vector<16x128xbf16>
    %c0_5 = arith.constant 0 : index
    %c0_6 = arith.constant 0 : index
    %4 = vector.load %arg5[%c0_5, %c0_6] : memref<128x128xbf16, #tpu.memory_space<vmem>>, vector<128x128xbf16>
    %cst_7 = arith.constant dense<0.000000e+00> : vector<16x128xf32>
    %5 = tpu.matmul %3, %4, %cst_7 {dimension_numbers = #tpu.dot_dimension_numbers<[1], [0], [0], [1], [0, 0, 1, 1], [], []>} : vector<16x128xbf16>, vector<128x128xbf16>, vector<16x128xf32> -> vector<16x128xf32>
    %6 = arith.addf %2, %5 : vector<16x128xf32>
    %c0_8 = arith.constant 0 : index
    %c0_9 = arith.constant 0 : index
    %7 = vector.load %arg6[%c0_8, %c0_9] : memref<16x128xbf16, #tpu.memory_space<vmem>>, vector<16x128xbf16>
    %c0_10 = arith.constant 0 : index
    %c0_11 = arith.constant 0 : index
    %8 = vector.load %arg7[%c0_10, %c0_11] : memref<128x128xbf16, #tpu.memory_space<vmem>>, vector<128x128xbf16>
    %cst_12 = arith.constant dense<0.000000e+00> : vector<16x128xf32>
    %9 = tpu.matmul %7, %8, %cst_12 {dimension_numbers = #tpu.dot_dimension_numbers<[1], [0], [0], [1], [0, 0, 1, 1], [], []>} : vector<16x128xbf16>, vector<128x128xbf16>, vector<16x128xf32> -> vector<16x128xf32>
    %10 = arith.addf %6, %9 : vector<16x128xf32>
    %c0_13 = arith.constant 0 : index
    %c0_14 = arith.constant 0 : index
    %11 = vector.load %arg8[%c0_13, %c0_14] : memref<1x128xf32, #tpu.memory_space<vmem>>, vector<1x128xf32>
    %12 = vector.broadcast %11 : vector<1x128xf32> to vector<16x128xf32>
    %13 = arith.addf %10, %12 : vector<16x128xf32>
    %cst_15 = arith.constant 0.000000e+00 : f32
    %14 = vector.broadcast %cst_15 : f32 to vector<16x128xf32>
    %15 = arith.cmpf ogt, %13, %14 : vector<16x128xf32>
    %cst_16 = arith.constant 0.00999999977 : f32
    %16 = vector.broadcast %cst_16 : f32 to vector<16x128xf32>
    %17 = arith.mulf %16, %13 : vector<16x128xf32>
    %18 = arith.select %15, %13, %17 : vector<16x128xi1>, vector<16x128xf32>
    %19 = arith.truncf %18 : vector<16x128xf32> to vector<16x128xbf16>
    %c0_17 = arith.constant 0 : index
    %c0_18 = arith.constant 0 : index
    %20 = vector.load %arg9[%c0_17, %c0_18] : memref<16x128xbf16, #tpu.memory_space<vmem>>, vector<16x128xbf16>
    tpu.vector_store %arg9[%c0_17, %c0_18], %19 {strides = array<i32>} : memref<16x128xbf16, #tpu.memory_space<vmem>>, vector<16x128xbf16>,
    return
  }
  func.func @transform_0(%arg0: i32, %arg1: i32) -> (i32, i32) {
    %c0_i32 = arith.constant 0 : i32
    %c0_i32_0 = arith.constant 0 : i32
    return %arg0, %c0_i32 : i32, i32
  }
  func.func @transform_1(%arg0: i32, %arg1: i32) -> (i32, i32) {
    %c0_i32 = arith.constant 0 : i32
    %c0_i32_0 = arith.constant 0 : i32
    return %c0_i32, %arg1 : i32, i32
  }
  func.func @transform_2(%arg0: i32, %arg1: i32) -> (i32, i32) {
    %c0_i32 = arith.constant 0 : i32
    %c0_i32_0 = arith.constant 0 : i32
    return %arg0, %c0_i32 : i32, i32
  }
  func.func @transform_3(%arg0: i32, %arg1: i32) -> (i32, i32) {
    %c0_i32 = arith.constant 0 : i32
    %c0_i32_0 = arith.constant 0 : i32
    return %c0_i32, %arg1 : i32, i32
  }
  func.func @transform_4(%arg0: i32, %arg1: i32) -> (i32, i32) {
    %c0_i32 = arith.constant 0 : i32
    %c0_i32_0 = arith.constant 0 : i32
    return %arg0, %c0_i32 : i32, i32
  }
  func.func @transform_5(%arg0: i32, %arg1: i32) -> (i32, i32) {
    %c0_i32 = arith.constant 0 : i32
    %c0_i32_0 = arith.constant 0 : i32
    return %c0_i32, %arg1 : i32, i32
  }
  func.func @transform_6(%arg0: i32, %arg1: i32) -> (i32, i32) {
    %c0_i32 = arith.constant 0 : i32
    %c0_i32_0 = arith.constant 0 : i32
    return %c0_i32, %arg1 : i32, i32
  }
  func.func @transform_7(%arg0: i32, %arg1: i32) -> (i32, i32) {
    %c0_i32 = arith.constant 0 : i32
    return %arg0, %arg1 : i32, i32
  }
}

module attributes {stable_mosaic.version = 11 : i64} {
  func.func @_fused_parts_kernel(%arg0: i32, %arg1: i32, %arg2: memref<8x128xbf16, #tpu.memory_space<vmem>>, %arg3: memref<128x128xbf16, #tpu.memory_space<vmem>>, %arg4: memref<8x128xbf16, #tpu.memory_space<vmem>>, %arg5: memref<128x128xbf16, #tpu.memory_space<vmem>>, %arg6: memref<1x128xf32, #tpu.memory_space<vmem>>, %arg7: memref<8x128xbf16, #tpu.memory_space<vmem>>) attributes {dimension_semantics = [#tpu.dimension_semantics<parallel>, #tpu.dimension_semantics<parallel>], iteration_bounds = array<i64: 1, 1>, scalar_prefetch = 0 : i64, scratch_operands = 0 : i64, tpu.core_type = #tpu.core_type<tc>, window_params = [{transform_indices = @transform_0, window_bounds = array<i64: 8, 128>}, {transform_indices = @transform_1, window_bounds = array<i64: 128, 128>}, {transform_indices = @transform_2, window_bounds = array<i64: 8, 128>}, {transform_indices = @transform_3, window_bounds = array<i64: 128, 128>}, {transform_indices = @transform_4, window_bounds = array<i64: 1, 128>}, {transform_indices = @transform_5, window_bounds = array<i64: 8, 128>}]} {
    %c0 = arith.constant 0 : index
    %c0_0 = arith.constant 0 : index
    %0 = vector.load %arg2[%c0, %c0_0] : memref<8x128xbf16, #tpu.memory_space<vmem>>, vector<8x128xbf16>
    %c0_1 = arith.constant 0 : index
    %c0_2 = arith.constant 0 : index
    %1 = vector.load %arg3[%c0_1, %c0_2] : memref<128x128xbf16, #tpu.memory_space<vmem>>, vector<128x128xbf16>
    %cst = arith.constant dense<0.000000e+00> : vector<8x128xf32>
    %2 = tpu.matmul %0, %1, %cst {dimension_numbers = #tpu.dot_dimension_numbers<[1], [0], [0], [1], [0, 0, 1, 1], [], []>} : vector<8x128xbf16>, vector<128x128xbf16>, vector<8x128xf32> -> vector<8x128xf32>
    %c0_3 = arith.constant 0 : index
    %c0_4 = arith.constant 0 : index
    %3 = vector.load %arg4[%c0_3, %c0_4] : memref<8x128xbf16, #tpu.memory_space<vmem>>, vector<8x128xbf16>
    %c0_5 = arith.constant 0 : index
    %c0_6 = arith.constant 0 : index
    %4 = vector.load %arg5[%c0_5, %c0_6] : memref<128x128xbf16, #tpu.memory_space<vmem>>, vector<128x128xbf16>
    %cst_7 = arith.constant dense<0.000000e+00> : vector<8x128xf32>
    %5 = tpu.matmul %3, %4, %cst_7 {dimension_numbers = #tpu.dot_dimension_numbers<[1], [0], [0], [1], [0, 0, 1, 1], [], []>} : vector<8x128xbf16>, vector<128x128xbf16>, vector<8x128xf32> -> vector<8x128xf32>
    %6 = arith.addf %2, %5 : vector<8x128xf32>
    %c0_8 = arith.constant 0 : index
    %c0_9 = arith.constant 0 : index
    %7 = vector.load %arg6[%c0_8, %c0_9] : memref<1x128xf32, #tpu.memory_space<vmem>>, vector<1x128xf32>
    %8 = vector.broadcast %7 : vector<1x128xf32> to vector<8x128xf32>
    %9 = arith.addf %6, %8 : vector<8x128xf32>
    %cst_10 = arith.constant 0.000000e+00 : f32
    %10 = vector.broadcast %cst_10 : f32 to vector<8x128xf32>
    %11 = arith.cmpf ogt, %9, %10 : vector<8x128xf32>
    %cst_11 = arith.constant 0.00999999977 : f32
    %12 = vector.broadcast %cst_11 : f32 to vector<8x128xf32>
    %13 = arith.mulf %12, %9 : vector<8x128xf32>
    %14 = arith.select %11, %9, %13 : vector<8x128xi1>, vector<8x128xf32>
    %15 = arith.truncf %14 : vector<8x128xf32> to vector<8x128xbf16>
    %c0_12 = arith.constant 0 : index
    %c0_13 = arith.constant 0 : index
    %16 = vector.load %arg7[%c0_12, %c0_13] : memref<8x128xbf16, #tpu.memory_space<vmem>>, vector<8x128xbf16>
    tpu.vector_store %arg7[%c0_12, %c0_13], %15 {strides = array<i32>} : memref<8x128xbf16, #tpu.memory_space<vmem>>, vector<8x128xbf16>,
    return
  }
  func.func @transform_0(%arg0: i32, %arg1: i32) -> (i32, i32) {
    %c0_i32 = arith.constant 0 : i32
    %c0_i32_0 = arith.constant 0 : i32
    return %arg0, %c0_i32 : i32, i32
  }
  func.func @transform_1(%arg0: i32, %arg1: i32) -> (i32, i32) {
    %c0_i32 = arith.constant 0 : i32
    %c0_i32_0 = arith.constant 0 : i32
    return %c0_i32, %arg1 : i32, i32
  }
  func.func @transform_2(%arg0: i32, %arg1: i32) -> (i32, i32) {
    %c0_i32 = arith.constant 0 : i32
    %c0_i32_0 = arith.constant 0 : i32
    return %arg0, %c0_i32 : i32, i32
  }
  func.func @transform_3(%arg0: i32, %arg1: i32) -> (i32, i32) {
    %c0_i32 = arith.constant 0 : i32
    %c0_i32_0 = arith.constant 0 : i32
    return %c0_i32, %arg1 : i32, i32
  }
  func.func @transform_4(%arg0: i32, %arg1: i32) -> (i32, i32) {
    %c0_i32 = arith.constant 0 : i32
    %c0_i32_0 = arith.constant 0 : i32
    return %c0_i32, %arg1 : i32, i32
  }
  func.func @transform_5(%arg0: i32, %arg1: i32) -> (i32, i32) {
    %c0_i32 = arith.constant 0 : i32
    return %arg0, %arg1 : i32, i32
  }
}

module attributes {stable_mosaic.version = 11 : i64} {
  func.func @_fused_parts_kernel(%arg0: i32, %arg1: i32, %arg2: memref<16x128xbf16, #tpu.memory_space<vmem>>, %arg3: memref<128x256xbf16, #tpu.memory_space<vmem>>, %arg4: memref<16x128xbf16, #tpu.memory_space<vmem>>, %arg5: memref<128x256xbf16, #tpu.memory_space<vmem>>, %arg6: memref<1x256xf32, #tpu.memory_space<vmem>>, %arg7: memref<16x256xbf16, #tpu.memory_space<vmem>>) attributes {dimension_semantics = [#tpu.dimension_semantics<parallel>, #tpu.dimension_semantics<parallel>], iteration_bounds = array<i64: 1, 2>, scalar_prefetch = 0 : i64, scratch_operands = 0 : i64, tpu.core_type = #tpu.core_type<tc>, window_params = [{transform_indices = @transform_0, window_bounds = array<i64: 16, 128>}, {transform_indices = @transform_1, window_bounds = array<i64: 128, 256>}, {transform_indices = @transform_2, window_bounds = array<i64: 16, 128>}, {transform_indices = @transform_3, window_bounds = array<i64: 128, 256>}, {transform_indices = @transform_4, window_bounds = array<i64: 1, 256>}, {transform_indices = @transform_5, window_bounds = array<i64: 16, 256>}]} {
    %c0 = arith.constant 0 : index
    %c0_0 = arith.constant 0 : index
    %0 = vector.load %arg2[%c0, %c0_0] : memref<16x128xbf16, #tpu.memory_space<vmem>>, vector<16x128xbf16>
    %c0_1 = arith.constant 0 : index
    %c0_2 = arith.constant 0 : index
    %1 = vector.load %arg3[%c0_1, %c0_2] : memref<128x256xbf16, #tpu.memory_space<vmem>>, vector<128x256xbf16>
    %cst = arith.constant dense<0.000000e+00> : vector<16x256xf32>
    %2 = tpu.matmul %0, %1, %cst {dimension_numbers = #tpu.dot_dimension_numbers<[1], [0], [0], [1], [0, 0, 1, 1], [], []>} : vector<16x128xbf16>, vector<128x256xbf16>, vector<16x256xf32> -> vector<16x256xf32>
    %c0_3 = arith.constant 0 : index
    %c0_4 = arith.constant 0 : index
    %3 = vector.load %arg4[%c0_3, %c0_4] : memref<16x128xbf16, #tpu.memory_space<vmem>>, vector<16x128xbf16>
    %c0_5 = arith.constant 0 : index
    %c0_6 = arith.constant 0 : index
    %4 = vector.load %arg5[%c0_5, %c0_6] : memref<128x256xbf16, #tpu.memory_space<vmem>>, vector<128x256xbf16>
    %cst_7 = arith.constant dense<0.000000e+00> : vector<16x256xf32>
    %5 = tpu.matmul %3, %4, %cst_7 {dimension_numbers = #tpu.dot_dimension_numbers<[1], [0], [0], [1], [0, 0, 1, 1], [], []>} : vector<16x128xbf16>, vector<128x256xbf16>, vector<16x256xf32> -> vector<16x256xf32>
    %6 = arith.addf %2, %5 : vector<16x256xf32>
    %c0_8 = arith.constant 0 : index
    %c0_9 = arith.constant 0 : index
    %7 = vector.load %arg6[%c0_8, %c0_9] : memref<1x256xf32, #tpu.memory_space<vmem>>, vector<1x256xf32>
    %8 = vector.broadcast %7 : vector<1x256xf32> to vector<16x256xf32>
    %9 = arith.addf %6, %8 : vector<16x256xf32>
    %cst_10 = arith.constant 0.000000e+00 : f32
    %10 = vector.broadcast %cst_10 : f32 to vector<16x256xf32>
    %11 = arith.maximumf %9, %10 : vector<16x256xf32>
    %12 = arith.truncf %11 : vector<16x256xf32> to vector<16x256xbf16>
    %c0_11 = arith.constant 0 : index
    %c0_12 = arith.constant 0 : index
    %13 = vector.load %arg7[%c0_11, %c0_12] : memref<16x256xbf16, #tpu.memory_space<vmem>>, vector<16x256xbf16>
    tpu.vector_store %arg7[%c0_11, %c0_12], %12 {strides = array<i32>} : memref<16x256xbf16, #tpu.memory_space<vmem>>, vector<16x256xbf16>,
    return
  }
  func.func @transform_0(%arg0: i32, %arg1: i32) -> (i32, i32) {
    %c0_i32 = arith.constant 0 : i32
    %c0_i32_0 = arith.constant 0 : i32
    return %arg0, %c0_i32 : i32, i32
  }
  func.func @transform_1(%arg0: i32, %arg1: i32) -> (i32, i32) {
    %c0_i32 = arith.constant 0 : i32
    %c0_i32_0 = arith.constant 0 : i32
    return %c0_i32, %arg1 : i32, i32
  }
  func.func @transform_2(%arg0: i32, %arg1: i32) -> (i32, i32) {
    %c0_i32 = arith.constant 0 : i32
    %c0_i32_0 = arith.constant 0 : i32
    return %arg0, %c0_i32 : i32, i32
  }
  func.func @transform_3(%arg0: i32, %arg1: i32) -> (i32, i32) {
    %c0_i32 = arith.constant 0 : i32
    %c0_i32_0 = arith.constant 0 : i32
    return %c0_i32, %arg1 : i32, i32
  }
  func.func @transform_4(%arg0: i32, %arg1: i32) -> (i32, i32) {
    %c0_i32 = arith.constant 0 : i32
    %c0_i32_0 = arith.constant 0 : i32
    return %c0_i32, %arg1 : i32, i32
  }
  func.func @transform_5(%arg0: i32, %arg1: i32) -> (i32, i32) {
    %c0_i32 = arith.constant 0 : i32
    return %arg0, %arg1 : i32, i32
  }
}

module attributes {stable_mosaic.version = 11 : i64} {
  func.func @_tiled_linear_kernel(%arg0: i32, %arg1: i32, %arg2: i32, %arg3: memref<16x512xbf16, #tpu.memory_space<vmem>>, %arg4: memref<512x256xbf16, #tpu.memory_space<vmem>>, %arg5: memref<1x256xf32, #tpu.memory_space<vmem>>, %arg6: memref<16x256xbf16, #tpu.memory_space<vmem>>, %arg7: memref<16x256xf32, #tpu.memory_space<vmem>>) attributes {dimension_semantics = [#tpu.dimension_semantics<parallel>, #tpu.dimension_semantics<parallel>, #tpu.dimension_semantics<arbitrary>], iteration_bounds = array<i64: 1, 1, 1>, scalar_prefetch = 0 : i64, scratch_operands = 1 : i64, tpu.core_type = #tpu.core_type<tc>, window_params = [{transform_indices = @transform_0, window_bounds = array<i64: 16, 512>}, {transform_indices = @transform_1, window_bounds = array<i64: 512, 256>}, {transform_indices = @transform_2, window_bounds = array<i64: 1, 256>}, {transform_indices = @transform_3, window_bounds = array<i64: 16, 256>}]} {
    %c0_i32 = arith.constant 0 : i32
    %0 = arith.cmpi eq, %arg2, %c0_i32 : i32
    %1 = arith.extui %0 : i1 to i32
    %c0_i32_0 = arith.constant 0 : i32
    %2 = arith.cmpi ne, %1, %c0_i32_0 : i32
    scf.if %2 {
      %cst_10 = arith.constant 0.000000e+00 : f32
      %12 = vector.broadcast %cst_10 : f32 to vector<16x256xf32>
      %c0_11 = arith.constant 0 : index
      %c0_12 = arith.constant 0 : index
      %13 = vector.load %arg7[%c0_11, %c0_12] : memref<16x256xf32, #tpu.memory_space<vmem>>, vector<16x256xf32>
      tpu.vector_store %arg7[%c0_11, %c0_12], %12 {strides = array<i32>} : memref<16x256xf32, #tpu.memory_space<vmem>>, vector<16x256xf32>,
    } else {
    }
    %c0 = arith.constant 0 : index
    %c0_1 = arith.constant 0 : index
    %3 = vector.load %arg7[%c0, %c0_1] : memref<16x256xf32, #tpu.memory_space<vmem>>, vector<16x256xf32>
    %c0_2 = arith.constant 0 : index
    %c0_3 = arith.constant 0 : index
    %4 = vector.load %arg3[%c0_2, %c0_3] : memref<16x512xbf16, #tpu.memory_space<vmem>>, vector<16x512xbf16>
    %c0_4 = arith.constant 0 : index
    %c0_5 = arith.constant 0 : index
    %5 = vector.load %arg4[%c0_4, %c0_5] : memref<512x256xbf16, #tpu.memory_space<vmem>>, vector<512x256xbf16>
    %cst = arith.constant dense<0.000000e+00> : vector<16x256xf32>
    %6 = tpu.matmul %4, %5, %cst {dimension_numbers = #tpu.dot_dimension_numbers<[1], [0], [0], [1], [0, 0, 1, 1], [], []>} : vector<16x512xbf16>, vector<512x256xbf16>, vector<16x256xf32> -> vector<16x256xf32>
    %7 = arith.addf %3, %6 : vector<16x256xf32>
    %c0_6 = arith.constant 0 : index
    %c0_7 = arith.constant 0 : index
    %8 = vector.load %arg7[%c0_6, %c0_7] : memref<16x256xf32, #tpu.memory_space<vmem>>, vector<16x256xf32>
    tpu.vector_store %arg7[%c0_6, %c0_7], %7 {strides = array<i32>} : memref<16x256xf32, #tpu.memory_space<vmem>>, vector<16x256xf32>,
    %c0_i32_8 = arith.constant 0 : i32
    %9 = arith.cmpi eq, %arg2, %c0_i32_8 : i32
    %10 = arith.extui %9 : i1 to i32
    %c0_i32_9 = arith.constant 0 : i32
    %11 = arith.cmpi ne, %10, %c0_i32_9 : i32
    scf.if %11 {
      %c0_10 = arith.constant 0 : index
      %c0_11 = arith.constant 0 : index
      %12 = vector.load %arg7[%c0_10, %c0_11] : memref<16x256xf32, #tpu.memory_space<vmem>>, vector<16x256xf32>
      %c0_12 = arith.constant 0 : index
      %c0_13 = arith.constant 0 : index
      %13 = vector.load %arg5[%c0_12, %c0_13] : memref<1x256xf32, #tpu.memory_space<vmem>>, vector<1x256xf32>
      %14 = vector.broadcast %13 : vector<1x256xf32> to vector<16x256xf32>
      %15 = arith.addf %12, %14 : vector<16x256xf32>
      %cst_14 = arith.constant 0.000000e+00 : f32
      %16 = vector.broadcast %cst_14 : f32 to vector<16x256xf32>
      %17 = arith.maximumf %15, %16 : vector<16x256xf32>
      %18 = arith.truncf %17 : vector<16x256xf32> to vector<16x256xbf16>
      %c0_15 = arith.constant 0 : index
      %c0_16 = arith.constant 0 : index
      %19 = vector.load %arg6[%c0_15, %c0_16] : memref<16x256xbf16, #tpu.memory_space<vmem>>, vector<16x256xbf16>
      tpu.vector_store %arg6[%c0_15, %c0_16], %18 {strides = array<i32>} : memref<16x256xbf16, #tpu.memory_space<vmem>>, vector<16x256xbf16>,
    } else {
    }
    return
  }
  func.func @transform_0(%arg0: i32, %arg1: i32, %arg2: i32) -> (i32, i32) {
    %c0_i32 = arith.constant 0 : i32
    return %arg0, %arg2 : i32, i32
  }
  func.func @transform_1(%arg0: i32, %arg1: i32, %arg2: i32) -> (i32, i32) {
    %c0_i32 = arith.constant 0 : i32
    return %arg2, %arg1 : i32, i32
  }
  func.func @transform_2(%arg0: i32, %arg1: i32, %arg2: i32) -> (i32, i32) {
    %c0_i32 = arith.constant 0 : i32
    %c0_i32_0 = arith.constant 0 : i32
    return %c0_i32, %arg1 : i32, i32
  }
  func.func @transform_3(%arg0: i32, %arg1: i32, %arg2: i32) -> (i32, i32) {
    %c0_i32 = arith.constant 0 : i32
    return %arg0, %arg1 : i32, i32
  }
}

module attributes {stable_mosaic.version = 11 : i64} {
  func.func @_tiled_linear_kernel(%arg0: i32, %arg1: i32, %arg2: i32, %arg3: memref<16x256xbf16, #tpu.memory_space<vmem>>, %arg4: memref<256x128xbf16, #tpu.memory_space<vmem>>, %arg5: memref<1x128xf32, #tpu.memory_space<vmem>>, %arg6: memref<16x128xf32, #tpu.memory_space<vmem>>, %arg7: memref<16x128xf32, #tpu.memory_space<vmem>>) attributes {dimension_semantics = [#tpu.dimension_semantics<parallel>, #tpu.dimension_semantics<parallel>, #tpu.dimension_semantics<arbitrary>], iteration_bounds = array<i64: 1, 1, 1>, scalar_prefetch = 0 : i64, scratch_operands = 1 : i64, tpu.core_type = #tpu.core_type<tc>, window_params = [{transform_indices = @transform_0, window_bounds = array<i64: 16, 256>}, {transform_indices = @transform_1, window_bounds = array<i64: 256, 128>}, {transform_indices = @transform_2, window_bounds = array<i64: 1, 128>}, {transform_indices = @transform_3, window_bounds = array<i64: 16, 128>}]} {
    %c0_i32 = arith.constant 0 : i32
    %0 = arith.cmpi eq, %arg2, %c0_i32 : i32
    %1 = arith.extui %0 : i1 to i32
    %c0_i32_0 = arith.constant 0 : i32
    %2 = arith.cmpi ne, %1, %c0_i32_0 : i32
    scf.if %2 {
      %cst_10 = arith.constant 0.000000e+00 : f32
      %12 = vector.broadcast %cst_10 : f32 to vector<16x128xf32>
      %c0_11 = arith.constant 0 : index
      %c0_12 = arith.constant 0 : index
      %13 = vector.load %arg7[%c0_11, %c0_12] : memref<16x128xf32, #tpu.memory_space<vmem>>, vector<16x128xf32>
      tpu.vector_store %arg7[%c0_11, %c0_12], %12 {strides = array<i32>} : memref<16x128xf32, #tpu.memory_space<vmem>>, vector<16x128xf32>,
    } else {
    }
    %c0 = arith.constant 0 : index
    %c0_1 = arith.constant 0 : index
    %3 = vector.load %arg7[%c0, %c0_1] : memref<16x128xf32, #tpu.memory_space<vmem>>, vector<16x128xf32>
    %c0_2 = arith.constant 0 : index
    %c0_3 = arith.constant 0 : index
    %4 = vector.load %arg3[%c0_2, %c0_3] : memref<16x256xbf16, #tpu.memory_space<vmem>>, vector<16x256xbf16>
    %c0_4 = arith.constant 0 : index
    %c0_5 = arith.constant 0 : index
    %5 = vector.load %arg4[%c0_4, %c0_5] : memref<256x128xbf16, #tpu.memory_space<vmem>>, vector<256x128xbf16>
    %cst = arith.constant dense<0.000000e+00> : vector<16x128xf32>
    %6 = tpu.matmul %4, %5, %cst {dimension_numbers = #tpu.dot_dimension_numbers<[1], [0], [0], [1], [0, 0, 1, 1], [], []>} : vector<16x256xbf16>, vector<256x128xbf16>, vector<16x128xf32> -> vector<16x128xf32>
    %7 = arith.addf %3, %6 : vector<16x128xf32>
    %c0_6 = arith.constant 0 : index
    %c0_7 = arith.constant 0 : index
    %8 = vector.load %arg7[%c0_6, %c0_7] : memref<16x128xf32, #tpu.memory_space<vmem>>, vector<16x128xf32>
    tpu.vector_store %arg7[%c0_6, %c0_7], %7 {strides = array<i32>} : memref<16x128xf32, #tpu.memory_space<vmem>>, vector<16x128xf32>,
    %c0_i32_8 = arith.constant 0 : i32
    %9 = arith.cmpi eq, %arg2, %c0_i32_8 : i32
    %10 = arith.extui %9 : i1 to i32
    %c0_i32_9 = arith.constant 0 : i32
    %11 = arith.cmpi ne, %10, %c0_i32_9 : i32
    scf.if %11 {
      %c0_10 = arith.constant 0 : index
      %c0_11 = arith.constant 0 : index
      %12 = vector.load %arg7[%c0_10, %c0_11] : memref<16x128xf32, #tpu.memory_space<vmem>>, vector<16x128xf32>
      %c0_12 = arith.constant 0 : index
      %c0_13 = arith.constant 0 : index
      %13 = vector.load %arg5[%c0_12, %c0_13] : memref<1x128xf32, #tpu.memory_space<vmem>>, vector<1x128xf32>
      %14 = vector.broadcast %13 : vector<1x128xf32> to vector<16x128xf32>
      %15 = arith.addf %12, %14 : vector<16x128xf32>
      %c0_14 = arith.constant 0 : index
      %c0_15 = arith.constant 0 : index
      %16 = vector.load %arg6[%c0_14, %c0_15] : memref<16x128xf32, #tpu.memory_space<vmem>>, vector<16x128xf32>
      tpu.vector_store %arg6[%c0_14, %c0_15], %15 {strides = array<i32>} : memref<16x128xf32, #tpu.memory_space<vmem>>, vector<16x128xf32>,
    } else {
    }
    return
  }
  func.func @transform_0(%arg0: i32, %arg1: i32, %arg2: i32) -> (i32, i32) {
    %c0_i32 = arith.constant 0 : i32
    return %arg0, %arg2 : i32, i32
  }
  func.func @transform_1(%arg0: i32, %arg1: i32, %arg2: i32) -> (i32, i32) {
    %c0_i32 = arith.constant 0 : i32
    return %arg2, %arg1 : i32, i32
  }
  func.func @transform_2(%arg0: i32, %arg1: i32, %arg2: i32) -> (i32, i32) {
    %c0_i32 = arith.constant 0 : i32
    %c0_i32_0 = arith.constant 0 : i32
    return %c0_i32, %arg1 : i32, i32
  }
  func.func @transform_3(%arg0: i32, %arg1: i32, %arg2: i32) -> (i32, i32) {
    %c0_i32 = arith.constant 0 : i32
    return %arg0, %arg1 : i32, i32
  }
}

</mosaic_0001>

<bundles_post_ra>
// kernel: hetero_tcr_forward.26
= control target key start
LH: loop header
LB: loop body
LE: loop exit
PB: predicated region body
PF: predicated region fallthrough
CT: control target
= control target key end

     0   :  { %v182_v0 = vmov 0.0   ;;  %vm183_vm0 = vmmov 0   ;;  %s229_s1 = inlined_call_operand.vmem [shape: bf16[128,128], index: 1, kind: input, shape index: {}]   ;;  %s230_s0 = inlined_call_operand.vmem [shape: bf16[8,128], index: 0, kind: input, shape index: {}]   ;;  %s231_s2 = inlined_call_operand.vmem [shape: bf16[8,128], index: 2, kind: output, shape index: {}]  }
   0x1   :  { %152 = vmatprep.subr.bf16.mxu0 %v182_v0  ;;  %v174_v1 = vld [vmem:[%s229_s1] sm:$0xff]   ;;  %168 = vmatprep.mubr.msk.bf16.mxu0 %vm183_vm0, %v182_v0  ;;  %v175_v2 = vld [vmem:[%s229_s1 + $0x8] sm:$0xff]   ;;  %v176_v3 = vld [vmem:[%s229_s1 + $0x10] sm:$0xff]  }
   0x2   :  { %153 = vmatpush3.bf16.msra.mxu0 %v174_v1  ;;  %v177_v4 = vld [vmem:[%s229_s1 + $0x18] sm:$0xff]   ;;  %v178_v5 = vld [vmem:[%s229_s1 + $0x20] sm:$0xff]   ;;  %v179_v6 = vld [vmem:[%s229_s1 + $0x28] sm:$0xff]  }
   0x3   :  { %154 = vmatprep.subr.bf16.mxu0 %v182_v0  ;;  %v180_v7 = vld [vmem:[%s229_s1 + $0x30] sm:$0xff]   ;;  %v181_v8 = vld [vmem:[%s229_s1 + $0x38] sm:$0xff]   ;;  %v18_v9 = vld [vmem:[%s230_s0] sm:$0xf] }
   0x6   :  { %155 = vmatpush3.bf16.msra.mxu0 %v175_v2 }
   0x7   :  { %156 = vmatprep.subr.bf16.mxu0 %v182_v0 }
   0xa   :  { %157 = vmatpush3.bf16.msra.mxu0 %v176_v3 }
   0xb   :  { %158 = vmatprep.subr.bf16.mxu0 %v182_v0 }
   0xe   :  { %159 = vmatpush3.bf16.msra.mxu0 %v177_v4 }
   0xf   :  { %160 = vmatprep.subr.bf16.mxu0 %v182_v0 }
  0x12   :  { %161 = vmatpush3.bf16.msra.mxu0 %v178_v5 }
  0x13   :  { %162 = vmatprep.subr.bf16.mxu0 %v182_v0 }
  0x16   :  { %163 = vmatpush3.bf16.msra.mxu0 %v179_v6 }
  0x17   :  { %164 = vmatprep.subr.bf16.mxu0 %v182_v0 }
  0x1a   :  { %165 = vmatpush3.bf16.msra.mxu0 %v180_v7 }
  0x1b   :  { %166 = vmatprep.subr.bf16.mxu0 %v182_v0 }
  0x1e   :  { %167 = vmatpush3.bf16.msra.mxu0 %v181_v8 }
  0x21   :  { %169 = vmatmul.mubr.bf16.vlgmr.msra.gmra.mrb[0].mxu0 %v18_v9 }
  0xf4   :  { %v117_v10 = vpop.f32.mrb[0].mxu0 }
  0xf5   :  { %v129_v11 = vpack.c.bf16 %v117_v10, %v117_v10  ;;  %v170_v12 = vpop.f32.mrb[1].mxu0 }
  0xf6   :  { %v120_v13 = vpop.f32.mrb[2].mxu0 }
  0xf7   :  { %130 = vst [vmem:[%s231_s2] sm:$0xf] %v129_v11  ;;  %v171_v14 = vpop.f32.mrb[3].mxu0 }

// kernel: hetero_tcr_forward.24
= control target key start
LH: loop header
LB: loop body
LE: loop exit
PB: predicated region body
PF: predicated region fallthrough
CT: control target
= control target key end

     0   :  { %v214_v0 = vmov 0.0   ;;  %vm215_vm0 = vmmov 0   ;;  %s261_s1 = inlined_call_operand.vmem [shape: bf16[128,128], index: 1, kind: input, shape index: {}]   ;;  %s262_s0 = inlined_call_operand.vmem [shape: bf16[16,128], index: 0, kind: input, shape index: {}]   ;;  %s263_s2 = inlined_call_operand.vmem [shape: bf16[16,128], index: 2, kind: output, shape index: {}]  }
   0x1   :  { %183 = vmatprep.subr.bf16.mxu0 %v214_v0  ;;  %v205_v1 = vld [vmem:[%s261_s1] sm:$0xff]   ;;  %199 = vmatprep.mubr.msk.bf16.mxu0 %vm215_vm0, %v214_v0  ;;  %v206_v2 = vld [vmem:[%s261_s1 + $0x8] sm:$0xff]   ;;  %v207_v3 = vld [vmem:[%s261_s1 + $0x10] sm:$0xff]  }
   0x2   :  { %184 = vmatpush3.bf16.msra.mxu0 %v205_v1  ;;  %v208_v4 = vld [vmem:[%s261_s1 + $0x18] sm:$0xff]   ;;  %v209_v5 = vld [vmem:[%s261_s1 + $0x20] sm:$0xff]   ;;  %v210_v6 = vld [vmem:[%s261_s1 + $0x28] sm:$0xff]  }
   0x3   :  { %185 = vmatprep.subr.bf16.mxu0 %v214_v0  ;;  %v211_v7 = vld [vmem:[%s261_s1 + $0x30] sm:$0xff]   ;;  %v212_v8 = vld [vmem:[%s261_s1 + $0x38] sm:$0xff]   ;;  %v213_v9 = vld [vmem:[%s262_s0] sm:$0xff]  }
   0x6   :  { %186 = vmatpush3.bf16.msra.mxu0 %v206_v2 }
   0x7   :  { %187 = vmatprep.subr.bf16.mxu0 %v214_v0 }
   0xa   :  { %188 = vmatpush3.bf16.msra.mxu0 %v207_v3 }
   0xb   :  { %189 = vmatprep.subr.bf16.mxu0 %v214_v0 }
   0xe   :  { %190 = vmatpush3.bf16.msra.mxu0 %v208_v4 }
   0xf   :  { %191 = vmatprep.subr.bf16.mxu0 %v214_v0 }
  0x12   :  { %192 = vmatpush3.bf16.msra.mxu0 %v209_v5 }
  0x13   :  { %193 = vmatprep.subr.bf16.mxu0 %v214_v0 }
  0x16   :  { %194 = vmatpush3.bf16.msra.mxu0 %v210_v6 }
  0x17   :  { %195 = vmatprep.subr.bf16.mxu0 %v214_v0 }
  0x1a   :  { %196 = vmatpush3.bf16.msra.mxu0 %v211_v7 }
  0x1b   :  { %197 = vmatprep.subr.bf16.mxu0 %v214_v0 }
  0x1e   :  { %198 = vmatpush3.bf16.msra.mxu0 %v212_v8 }
  0x21   :  { %200 = vmatmul.mubr.bf16.vlgmr.msra.gmra.mrb[0].mxu0 %v213_v9 }
  0xf4   :  { %v126_v10 = vpop.f32.mrb[0].mxu0 }
  0xf5   :  { %v201_v11 = vpop.f32.mrb[1].mxu0 }
  0xf6   :  { %v129_v12 = vpop.f32.mrb[2].mxu0 }
  0xf7   :  { %v172_v13 = vpack.c.bf16 %v129_v12, %v126_v10  ;;  %v202_v14 = vpop.f32.mrb[3].mxu0 }
  0xf9   :  { %173 = vst [vmem:[%s263_s2] sm:$0xff] %v172_v13  }

// kernel: hetero_tcr_forward.29
= control target key start
LH: loop header
LB: loop body
LE: loop exit
PB: predicated region body
PF: predicated region fallthrough
CT: control target
= control target key end

     0   :  { %v341_v0 = vmov 0.0   ;;  %vm342_vm0 = vmmov 0   ;;  %s433_s3 = inlined_call_operand.vmem [shape: bf16[128,128], index: 3, kind: input, shape index: {}]   ;;  %s434_s1 = inlined_call_operand.vmem [shape: bf16[128,128], index: 1, kind: input, shape index: {}]   ;;  %s435_s2 = inlined_call_operand.vmem [shape: bf16[8,128], index: 2, kind: input, shape index: {}]   ;;  %s436_s0 = inlined_call_operand.vmem [shape: bf16[8,128], index: 0, kind: input, shape index: {}]   ;;  %s437_s4 = inlined_call_operand.vmem [shape: f32[1,128], index: 4, kind: input, shape index: {}]   ;;  %s438_s5 = inlined_call_operand.vmem [shape: bf16[8,128], index: 5, kind: output, shape index: {}]  }
   0x1   :  { %283 = vmatprep.subr.bf16.mxu0 %v341_v0  ;;  %303 = vmatprep.subr.bf16.mxu1 %v341_v0  ;;  %v325_v1 = vld [vmem:[%s433_s3] sm:$0xff]   ;;  %v327_v3 = vld [vmem:[%s433_s3 + $0x8] sm:$0xff]   ;;  %v329_v5 = vld [vmem:[%s433_s3 + $0x10] sm:$0xff]  }
   0x2   :  { %v326_v2 = vld [vmem:[%s434_s1] sm:$0xff]   ;;  %299 = vmatprep.mubr.msk.bf16.mxu0 %vm342_vm0, %v341_v0  ;;  %319 = vmatprep.mubr.msk.bf16.mxu1 %vm342_vm0, %v341_v0  ;;  %v328_v4 = vld [vmem:[%s434_s1 + $0x8] sm:$0xff]   ;;  %v330_v6 = vld [vmem:[%s434_s1 + $0x10] sm:$0xff]  }
   0x3   :  { %284 = vmatpush3.bf16.msra.mxu0 %v325_v1  ;;  %304 = vmatpush3.bf16.msra.mxu1 %v326_v2  ;;  %v331_v7 = vld [vmem:[%s433_s3 + $0x18] sm:$0xff]   ;;  %v333_v9 = vld [vmem:[%s433_s3 + $0x20] sm:$0xff]   ;;  %v335_v11 = vld [vmem:[%s433_s3 + $0x28] sm:$0xff]  }
   0x4   :  { %285 = vmatprep.subr.bf16.mxu0 %v341_v0  ;;  %305 = vmatprep.subr.bf16.mxu1 %v341_v0  ;;  %v332_v8 = vld [vmem:[%s434_s1 + $0x18] sm:$0xff]   ;;  %v334_v10 = vld [vmem:[%s434_s1 + $0x20] sm:$0xff]   ;;  %v336_v12 = vld [vmem:[%s434_s1 + $0x28] sm:$0xff]  }
   0x5   :  { %v337_v13 = vld [vmem:[%s433_s3 + $0x30] sm:$0xff]   ;;  %v339_v15 = vld [vmem:[%s433_s3 + $0x38] sm:$0xff]   ;;  %v38_v17 = vld [vmem:[%s435_s2] sm:$0xf] }
   0x6   :  { %v338_v14 = vld [vmem:[%s434_s1 + $0x30] sm:$0xff]   ;;  %v340_v16 = vld [vmem:[%s434_s1 + $0x38] sm:$0xff]   ;;  %v21_v18 = vld [vmem:[%s436_s0] sm:$0xf] }
   0x7   :  { %286 = vmatpush3.bf16.msra.mxu0 %v327_v3  ;;  %306 = vmatpush3.bf16.msra.mxu1 %v328_v4  ;;  %v264_v21 = vld [vmem:[%s437_s4] ss:$0 sm:$0xff] }
   0x8   :  { %287 = vmatprep.subr.bf16.mxu0 %v341_v0  ;;  %307 = vmatprep.subr.bf16.mxu1 %v341_v0 }
   0xb   :  { %288 = vmatpush3.bf16.msra.mxu0 %v329_v5  ;;  %308 = vmatpush3.bf16.msra.mxu1 %v330_v6 }
   0xc   :  { %289 = vmatprep.subr.bf16.mxu0 %v341_v0  ;;  %309 = vmatprep.subr.bf16.mxu1 %v341_v0 }
   0xf   :  { %290 = vmatpush3.bf16.msra.mxu0 %v331_v7  ;;  %310 = vmatpush3.bf16.msra.mxu1 %v332_v8 }
  0x10   :  { %291 = vmatprep.subr.bf16.mxu0 %v341_v0  ;;  %311 = vmatprep.subr.bf16.mxu1 %v341_v0 }
  0x13   :  { %292 = vmatpush3.bf16.msra.mxu0 %v333_v9  ;;  %312 = vmatpush3.bf16.msra.mxu1 %v334_v10 }
  0x14   :  { %293 = vmatprep.subr.bf16.mxu0 %v341_v0  ;;  %313 = vmatprep.subr.bf16.mxu1 %v341_v0 }
  0x17   :  { %294 = vmatpush3.bf16.msra.mxu0 %v335_v11  ;;  %314 = vmatpush3.bf16.msra.mxu1 %v336_v12 }
  0x18   :  { %295 = vmatprep.subr.bf16.mxu0 %v341_v0  ;;  %315 = vmatprep.subr.bf16.mxu1 %v341_v0 }
  0x1b   :  { %296 = vmatpush3.bf16.msra.mxu0 %v337_v13  ;;  %316 = vmatpush3.bf16.msra.mxu1 %v338_v14 }
  0x1c   :  { %297 = vmatprep.subr.bf16.mxu0 %v341_v0  ;;  %317 = vmatprep.subr.bf16.mxu1 %v341_v0 }
  0x1f   :  { %298 = vmatpush3.bf16.msra.mxu0 %v339_v15  ;;  %318 = vmatpush3.bf16.msra.mxu1 %v340_v16 }
  0x22   :  { %300 = vmatmul.mubr.bf16.vlgmr.msra.gmra.mrb[0].mxu0 %v38_v17  ;;  %320 = vmatmul.mubr.bf16.vlgmr.msra.gmra.mrb[0].mxu1 %v21_v18 }
  0xf5   :  { %v137_v19 = vpop.f32.mrb[0].mxu0  ;;  %v225_v20 = vpop.f32.mrb[0].mxu1 }
  0xf6   :  { %v301_v22 = vpop.f32.mrb[1].mxu0  ;;  %v226_v23 = vadd.f32 %v225_v20, %v137_v19  ;;  %v321_v24 = vpop.f32.mrb[1].mxu1 }
  0xf7   :  { %v140_v25 = vpop.f32.mrb[2].mxu0  ;;  %v228_v26 = vpop.f32.mrb[2].mxu1 }
  0xf8   :  { %v302_v27 = vpop.f32.mrb[3].mxu0  ;;  %v238_v28 = vadd.f32 %v264_v21, %v226_v23  ;;  %v322_v29 = vpop.f32.mrb[3].mxu1 }
  0xfa   :  { %vm239_vm1 = vcmp.gt.f32.partialorder %v238_v28, 0.0  ;;  %v240_v30 = vmul.f32 0.01, %v238_v28 }
  0xfc   :  { %v241_v31 = vsel %vm239_vm1, %v238_v28, %v240_v30 }
  0xfd   :  { %v242_v32 = vpack.c.bf16 %v241_v31, %v241_v31 }
  0xff   :  { %243 = vst [vmem:[%s438_s5] sm:$0xf] %v242_v32 }

// kernel: hetero_tcr_forward.28
= control target key start
LH: loop header
LB: loop body
LE: loop exit
PB: predicated region body
PF: predicated region fallthrough
CT: control target
= control target key end

     0   :  { %v550_v0 = vmov 0.0   ;;  %vm551_vm0 = vmmov 0   ;;  %s709_s3 = inlined_call_operand.vmem [shape: bf16[128,128], index: 3, kind: input, shape index: {}]   ;;  %s710_s1 = inlined_call_operand.vmem [shape: bf16[128,128], index: 1, kind: input, shape index: {}]   ;;  %s711_s2 = inlined_call_operand.vmem [shape: bf16[16,128], index: 2, kind: input, shape index: {}]   ;;  %s712_s0 = inlined_call_operand.vmem [shape: bf16[16,128], index: 0, kind: input, shape index: {}]   ;;  %s713_s5 = inlined_call_operand.vmem [shape: bf16[128,128], index: 5, kind: input, shape index: {}]   ;;  %s714_s4 = inlined_call_operand.vmem [shape: bf16[16,128], index: 4, kind: input, shape index: {}]   ;;  %s715_s6 = inlined_call_operand.vmem [shape: f32[1,128], index: 6, kind: input, shape index: {}]   ;;  %s716_s7 = inlined_call_operand.vmem [shape: bf16[16,128], index: 7, kind: output, shape index: {}]  }
   0x1   :  { %461 = vmatprep.subr.bf16.mxu0 %v550_v0  ;;  %481 = vmatprep.subr.bf16.mxu1 %v550_v0  ;;  %v523_v1 = vld [vmem:[%s709_s3] sm:$0xff]   ;;  %v525_v3 = vld [vmem:[%s709_s3 + $0x8] sm:$0xff]   ;;  %v527_v5 = vld [vmem:[%s709_s3 + $0x10] sm:$0xff]  }
   0x2   :  { %v524_v2 = vld [vmem:[%s710_s1] sm:$0xff]   ;;  %477 = vmatprep.mubr.msk.bf16.mxu0 %vm551_vm0, %v550_v0  ;;  %497 = vmatprep.mubr.msk.bf16.mxu1 %vm551_vm0, %v550_v0  ;;  %v526_v4 = vld [vmem:[%s710_s1 + $0x8] sm:$0xff]   ;;  %v528_v6 = vld [vmem:[%s710_s1 + $0x10] sm:$0xff]  }
   0x3   :  { %462 = vmatpush3.bf16.msra.mxu0 %v523_v1  ;;  %482 = vmatpush3.bf16.msra.mxu1 %v524_v2  ;;  %v529_v7 = vld [vmem:[%s709_s3 + $0x18] sm:$0xff]   ;;  %v531_v9 = vld [vmem:[%s709_s3 + $0x20] sm:$0xff]   ;;  %v533_v11 = vld [vmem:[%s709_s3 + $0x28] sm:$0xff]  }
   0x4   :  { %463 = vmatprep.subr.bf16.mxu0 %v550_v0  ;;  %483 = vmatprep.subr.bf16.mxu1 %v550_v0  ;;  %v530_v8 = vld [vmem:[%s710_s1 + $0x18] sm:$0xff]   ;;  %v532_v10 = vld [vmem:[%s710_s1 + $0x20] sm:$0xff]   ;;  %v534_v12 = vld [vmem:[%s710_s1 + $0x28] sm:$0xff]  }
   0x5   :  { %v535_v13 = vld [vmem:[%s709_s3 + $0x30] sm:$0xff]   ;;  %v537_v15 = vld [vmem:[%s709_s3 + $0x38] sm:$0xff]   ;;  %v539_v17 = vld [vmem:[%s711_s2] sm:$0xff]  }
   0x6   :  { %v536_v14 = vld [vmem:[%s710_s1 + $0x30] sm:$0xff]   ;;  %v538_v16 = vld [vmem:[%s710_s1 + $0x38] sm:$0xff]   ;;  %v540_v18 = vld [vmem:[%s712_s0] sm:$0xff]  }
   0x7   :  { %464 = vmatpush3.bf16.msra.mxu0 %v525_v3  ;;  %484 = vmatpush3.bf16.msra.mxu1 %v526_v4  ;;  %v541_v19 = vld [vmem:[%s713_s5] sm:$0xff]   ;;  %v542_v20 = vld [vmem:[%s713_s5 + $0x8] sm:$0xff]   ;;  %v543_v21 = vld [vmem:[%s713_s5 + $0x10] sm:$0xff]  }
   0x8   :  { %465 = vmatprep.subr.bf16.mxu0 %v550_v0  ;;  %485 = vmatprep.subr.bf16.mxu1 %v550_v0  ;;  %v544_v22 = vld [vmem:[%s713_s5 + $0x18] sm:$0xff]   ;;  %v545_v23 = vld [vmem:[%s713_s5 + $0x20] sm:$0xff]   ;;  %v546_v24 = vld [vmem:[%s713_s5 + $0x28] sm:$0xff]  }
   0x9   :  { %v547_v25 = vld [vmem:[%s713_s5 + $0x30] sm:$0xff]   ;;  %v548_v26 = vld [vmem:[%s713_s5 + $0x38] sm:$0xff]   ;;  %v549_v27 = vld [vmem:[%s714_s4] sm:$0xff]  }
   0xa   :  { %v424_v39 = vld [vmem:[%s715_s6] ss:$0 sm:$0xff] }
   0xb   :  { %466 = vmatpush3.bf16.msra.mxu0 %v527_v5  ;;  %486 = vmatpush3.bf16.msra.mxu1 %v528_v6 }
   0xc   :  { %467 = vmatprep.subr.bf16.mxu0 %v550_v0  ;;  %487 = vmatprep.subr.bf16.mxu1 %v550_v0 }
   0xf   :  { %468 = vmatpush3.bf16.msra.mxu0 %v529_v7  ;;  %488 = vmatpush3.bf16.msra.mxu1 %v530_v8 }
  0x10   :  { %469 = vmatprep.subr.bf16.mxu0 %v550_v0  ;;  %489 = vmatprep.subr.bf16.mxu1 %v550_v0 }
  0x13   :  { %470 = vmatpush3.bf16.msra.mxu0 %v531_v9  ;;  %490 = vmatpush3.bf16.msra.mxu1 %v532_v10 }
  0x14   :  { %471 = vmatprep.subr.bf16.mxu0 %v550_v0  ;;  %491 = vmatprep.subr.bf16.mxu1 %v550_v0 }
  0x17   :  { %472 = vmatpush3.bf16.msra.mxu0 %v533_v11  ;;  %492 = vmatpush3.bf16.msra.mxu1 %v534_v12 }
  0x18   :  { %473 = vmatprep.subr.bf16.mxu0 %v550_v0  ;;  %493 = vmatprep.subr.bf16.mxu1 %v550_v0 }
  0x1b   :  { %474 = vmatpush3.bf16.msra.mxu0 %v535_v13  ;;  %494 = vmatpush3.bf16.msra.mxu1 %v536_v14 }
  0x1c   :  { %475 = vmatprep.subr.bf16.mxu0 %v550_v0  ;;  %495 = vmatprep.subr.bf16.mxu1 %v550_v0 }
  0x1f   :  { %476 = vmatpush3.bf16.msra.mxu0 %v537_v15  ;;  %496 = vmatpush3.bf16.msra.mxu1 %v538_v16 }
  0x20   :  { %501 = vmatprep.subr.bf16.mxu0 %v550_v0 }
  0x22   :  { %478 = vmatmul.mubr.bf16.vlgmr.msra.gmra.mrb[0].mxu0 %v539_v17  ;;  %498 = vmatmul.mubr.bf16.vlgmr.msra.gmra.mrb[0].mxu1 %v540_v18 }
  0x23   :  { %502 = vmatpush3.bf16.msra.mxu0 %v541_v19  ;;  %517 = vmatprep.mubr.msk.bf16.mxu0 %vm551_vm0, %v550_v0 }
  0x24   :  { %503 = vmatprep.subr.bf16.mxu0 %v550_v0 }
  0x27   :  { %504 = vmatpush3.bf16.msra.mxu0 %v542_v20 }
  0x28   :  { %505 = vmatprep.subr.bf16.mxu0 %v550_v0 }
  0x2b   :  { %506 = vmatpush3.bf16.msra.mxu0 %v543_v21 }
  0x2c   :  { %507 = vmatprep.subr.bf16.mxu0 %v550_v0 }
  0x2f   :  { %508 = vmatpush3.bf16.msra.mxu0 %v544_v22 }
  0x30   :  { %509 = vmatprep.subr.bf16.mxu0 %v550_v0 }
  0x33   :  { %510 = vmatpush3.bf16.msra.mxu0 %v545_v23 }
  0x34   :  { %511 = vmatprep.subr.bf16.mxu0 %v550_v0 }
  0x37   :  { %512 = vmatpush3.bf16.msra.mxu0 %v546_v24 }
  0x38   :  { %513 = vmatprep.subr.bf16.mxu0 %v550_v0 }
  0x3b   :  { %514 = vmatpush3.bf16.msra.mxu0 %v547_v25 }
  0x3c   :  { %515 = vmatprep.subr.bf16.mxu0 %v550_v0 }
  0x3f   :  { %516 = vmatpush3.bf16.msra.mxu0 %v548_v26 }
  0x42   :  { %518 = vmatmul.mubr.bf16.vlgmr.msra.gmra.mrb[4].mxu0 %v549_v27 }
  0xf5   :  { %v151_v28 = vpop.f32.mrb[0].mxu0  ;;  %v246_v29 = vpop.f32.mrb[0].mxu1 }
  0xf6   :  { %v479_v30 = vpop.f32.mrb[1].mxu0  ;;  %v247_v31 = vadd.f32 %v246_v29, %v151_v28  ;;  %v499_v32 = vpop.f32.mrb[1].mxu1 }
  0xf7   :  { %v154_v33 = vpop.f32.mrb[2].mxu0  ;;  %v249_v34 = vpop.f32.mrb[2].mxu1 }
  0xf8   :  { %v480_v35 = vpop.f32.mrb[3].mxu0  ;;  %v250_v36 = vadd.f32 %v249_v34, %v154_v33  ;;  %v500_v37 = vpop.f32.mrb[3].mxu1 }
 0x115   :  { %v359_v38 = vpop.f32.mrb[4].mxu0 }
 0x116   :  { %v366_v40 = vadd.f32 %v359_v38, %v247_v31  ;;  %v519_v41 = vpop.f32.mrb[5].mxu0 }
 0x117   :  { %v362_v42 = vpop.f32.mrb[6].mxu0 }
 0x118   :  { %v375_v43 = vadd.f32 %v424_v39, %v366_v40  ;;  %v367_v44 = vadd.f32 %v362_v42, %v250_v36  ;;  %v520_v45 = vpop.f32.mrb[7].mxu0 }
 0x11a   :  { %v379_v46 = vmul.f32 0.01, %v375_v43  ;;  %v376_v47 = vadd.f32 %v424_v39, %v367_v44  ;;  %vm377_vm1 = vcmp.gt.f32.partialorder %v375_v43, 0.0 }
 0x11c   :  { %vm378_vm2 = vcmp.gt.f32.partialorder %v376_v47, 0.0  ;;  %v380_v48 = vmul.f32 0.01, %v376_v47  ;;  %v381_v49 = vsel %vm377_vm1, %v375_v43, %v379_v46 }
 0x11e   :  { %v382_v50 = vsel %vm378_vm2, %v376_v47, %v380_v48 }
 0x11f   :  { %v432_v51 = vpack.c.bf16 %v382_v50, %v381_v49 }
 0x121   :  { %433 = vst [vmem:[%s716_s7] sm:$0xff] %v432_v51  }

// kernel: hetero_tcr_forward.45
= control target key start
LH: loop header
LB: loop body
LE: loop exit
PB: predicated region body
PF: predicated region fallthrough
CT: control target
= control target key end

     0   :  { %s1242_s18 = smov 0   ;;  %s1244_s19 = smov 0   ;;  %s1413_s0 = inlined_call_operand.vmem [shape: bf16[16,128], index: 0, kind: input, shape index: {}]   ;;  %s1414_s1 = inlined_call_operand.vmem [shape: bf16[128,512], index: 1, kind: input, shape index: {}]   ;;  %s1415_s2 = inlined_call_operand.vmem [shape: bf16[16,128], index: 2, kind: input, shape index: {}]   ;;  %s1416_s3 = inlined_call_operand.vmem [shape: bf16[128,512], index: 3, kind: input, shape index: {}]   ;;  %s1417_s4 = inlined_call_operand.vmem [shape: f32[1,512], index: 4, kind: input, shape index: {}]   ;;  %s1418_s5 = inlined_call_operand.vmem [shape: bf16[16,512], index: 5, kind: output, shape index: {}]  }
   0x1   :  { %s1246_s20 = smov 0   ;;  %s1248_s21 = smov 0  }
   0x2   :  { %s1250_s22 = smov 0  }
   0x3 LB: > { %s24_s23 = sadd.s32 1, %s1205_s21  ;;  %s1013_s24 = sadd.s32 4294967295, %s1209_s22   ;;  %s1209_s22 = sphi %s1250_s22, %s15_s22   ;;  %s1205_s21 = sphi %s1248_s21, %s1424_s21   ;;  %s1201_s20 = sphi %s1246_s20, %s1423_s20   ;;  %s1197_s19 = sphi %s1244_s19, %s1422_s19   ;;  %s1193_s18 = sphi %s1242_s18, %s1421_s18  }
   0x4   : > { %p25_p0 = scmp.ge.s32.totalorder %s24_s23, 2  ;;  %p67_p1 = scmp.ne.s32.totalorder %s1197_s19, %s1193_s18 }
   0x5   : > { %p68_p2 = scmp.eq.s32.totalorder %s1209_s22, 0  ;;  %p177_p4 = scmp.eq.s32.totalorder %s1013_s24, 1 }
   0x6   : > { %s1426_s23 = smov (%p25_p0, %s24_s23), 0  ;;  %s60_s27 = sadd.s32 1, %s1197_s19 }
   0x7   : > { %p1274_p3 = por %p68_p2, %p67_p1  ;;  %s57_s26 = ssub.s32 %s1205_s21, %s1426_s23 }
   0x8   : > { %p58_p5 = scmp.eq.s32.totalorder %s57_s26, 0  ;;  %p1281_p6 = por %p177_p4, %p67_p1 }
   0x9   : > { %p1018_p7 = scmp.ge.s32.totalorder %s1209_s22, 2 }
   0xa   : > { %s1286_s29 = scalar_select %p58_p5, %s1197_s19, %s60_s27  }
   0xb   : > { %217 = sbr.rel (%p1018_p7) target bundleno = 42 (0x2a), region = 24 }
  0x12   : > { %220 = sbr.rel (!%p1274_p3) target bundleno = 30 (0x1e), region = 28  ;;  %s222_s30 = sand.u32 (%p1274_p3), 1, %s1197_s19  }
  0x13   : > { %s1071_s6 = sshll.u32 (%p1274_p3), %s1205_s21, 3  ;;  %s1019_s7 = sshll.u32 (%p1274_p3), %s222_s30, 7 }
  0x14   : > { %s1296_s10 = scalar_lea.vmem (%p1274_p3), %s1414_s1, %s1071_s6  ;;  %s224_s11 = scalar_lea.vmem (%p1274_p3), [#allocation2], %s1019_s7 }
  0x15   : > { %v285_v0 = vld [vmem:[%s1296_s10] sm:$0xff] (%p1274_p3)  ;;  %v287_v1 = vld [vmem:[%s1296_s10 + $0x10] sm:$0xff] (%p1274_p3) }
  0x16   : > { %v289_v2 = vld [vmem:[%s1296_s10 + $0x20] sm:$0xff] (%p1274_p3)  ;;  %286 = vst [vmem:[%s224_s11] sm:$0xff] (%p1274_p3), %v285_v0  ;;  %288 = vst [vmem:[%s224_s11 + $0x8] sm:$0xff] (%p1274_p3), %v287_v1  ;;  %v291_v3 = vld [vmem:[%s1296_s10 + $0x30] sm:$0xff] (%p1274_p3) }
  0x17   : > { %290 = vst [vmem:[%s224_s11 + $0x10] sm:$0xff] (%p1274_p3), %v289_v2  ;;  %v293_v4 = vld [vmem:[%s1296_s10 + $0x40] sm:$0xff] (%p1274_p3)  ;;  %v295_v5 = vld [vmem:[%s1296_s10 + $0x50] sm:$0xff] (%p1274_p3)  ;;  %292 = vst [vmem:[%s224_s11 + $0x18] sm:$0xff] (%p1274_p3), %v291_v3 }
  0x18   : > { %294 = vst [vmem:[%s224_s11 + $0x20] sm:$0xff] (%p1274_p3), %v293_v4  ;;  %296 = vst [vmem:[%s224_s11 + $0x28] sm:$0xff] (%p1274_p3), %v295_v5  ;;  %v297_v6 = vld [vmem:[%s1296_s10 + $0x60] sm:$0xff] (%p1274_p3)  ;;  %v299_v7 = vld [vmem:[%s1296_s10 + $0x70] sm:$0xff] (%p1274_p3) }
  0x19   : > { %v301_v8 = vld [vmem:[%s1296_s10 + $0x80] sm:$0xff]  ;;  %298 = vst [vmem:[%s224_s11 + $0x30] sm:$0xff] %v297_v6  ;;  %300 = vst [vmem:[%s224_s11 + $0x38] sm:$0xff] %v299_v7  ;;  %v303_v9 = vld [vmem:[%s1296_s10 + $0x90] sm:$0xff] }
  0x1a   : > { %302 = vst [vmem:[%s224_s11 + $0x40] sm:$0xff] %v301_v8  ;;  %v305_v10 = vld [vmem:[%s1296_s10 + $0xa0] sm:$0xff]  ;;  %v307_v11 = vld [vmem:[%s1296_s10 + $0xb0] sm:$0xff]  ;;  %304 = vst [vmem:[%s224_s11 + $0x48] sm:$0xff] %v303_v9 }
  0x1b   : > { %306 = vst [vmem:[%s224_s11 + $0x50] sm:$0xff] %v305_v10  ;;  %308 = vst [vmem:[%s224_s11 + $0x58] sm:$0xff] %v307_v11  ;;  %v309_v12 = vld [vmem:[%s1296_s10 + $0xc0] sm:$0xff]  ;;  %v311_v13 = vld [vmem:[%s1296_s10 + $0xd0] sm:$0xff] }
  0x1c   : > { %v313_v14 = vld [vmem:[%s1296_s10 + $0xe0] sm:$0xff]  ;;  %310 = vst [vmem:[%s224_s11 + $0x60] sm:$0xff] %v309_v12  ;;  %312 = vst [vmem:[%s224_s11 + $0x68] sm:$0xff] %v311_v13  ;;  %v315_v15 = vld [vmem:[%s1296_s10 + $0xf0] sm:$0xff] }
  0x1d   : > { %314 = vst [vmem:[%s224_s11 + $0x70] sm:$0xff] %v313_v14  ;;  %316 = vst [vmem:[%s224_s11 + $0x78] sm:$0xff] %v315_v15 }
  0x1e PF: > { %322 = sbr.rel (!%p1274_p3) target bundleno = 42 (0x2a), region = 66  ;;  %s324_s12 = sand.u32 (%p1274_p3), 1, %s1197_s19  }
  0x1f   : > { %s1072_s13 = sshll.u32 (%p1274_p3), %s1205_s21, 3  ;;  %s1022_s14 = sshll.u32 (%p1274_p3), %s324_s12, 7 }
  0x20   : > { %s1321_s17 = scalar_lea.vmem (%p1274_p3), %s1416_s3, %s1072_s13  ;;  %s326_s24 = scalar_lea.vmem (%p1274_p3), [#allocation3], %s1022_s14 }
  0x21   : > { %v387_v16 = vld [vmem:[%s1321_s17] sm:$0xff] (%p1274_p3)  ;;  %v389_v17 = vld [vmem:[%s1321_s17 + $0x10] sm:$0xff] (%p1274_p3) }
  0x22   : > { %v391_v18 = vld [vmem:[%s1321_s17 + $0x20] sm:$0xff] (%p1274_p3)  ;;  %388 = vst [vmem:[%s326_s24] sm:$0xff] (%p1274_p3), %v387_v16  ;;  %390 = vst [vmem:[%s326_s24 + $0x8] sm:$0xff] (%p1274_p3), %v389_v17  ;;  %v393_v19 = vld [vmem:[%s1321_s17 + $0x30] sm:$0xff] (%p1274_p3) }
  0x23   : > { %392 = vst [vmem:[%s326_s24 + $0x10] sm:$0xff] (%p1274_p3), %v391_v18  ;;  %v395_v20 = vld [vmem:[%s1321_s17 + $0x40] sm:$0xff] (%p1274_p3)  ;;  %v397_v21 = vld [vmem:[%s1321_s17 + $0x50] sm:$0xff] (%p1274_p3)  ;;  %394 = vst [vmem:[%s326_s24 + $0x18] sm:$0xff] (%p1274_p3), %v393_v19 }
  0x24   : > { %396 = vst [vmem:[%s326_s24 + $0x20] sm:$0xff] (%p1274_p3), %v395_v20  ;;  %398 = vst [vmem:[%s326_s24 + $0x28] sm:$0xff] (%p1274_p3), %v397_v21  ;;  %v399_v22 = vld [vmem:[%s1321_s17 + $0x60] sm:$0xff] (%p1274_p3)  ;;  %v401_v23 = vld [vmem:[%s1321_s17 + $0x70] sm:$0xff] (%p1274_p3) }
  0x25   : > { %v403_v24 = vld [vmem:[%s1321_s17 + $0x80] sm:$0xff]  ;;  %400 = vst [vmem:[%s326_s24 + $0x30] sm:$0xff] %v399_v22  ;;  %402 = vst [vmem:[%s326_s24 + $0x38] sm:$0xff] %v401_v23  ;;  %v405_v25 = vld [vmem:[%s1321_s17 + $0x90] sm:$0xff] }
  0x26   : > { %404 = vst [vmem:[%s326_s24 + $0x40] sm:$0xff] %v403_v24  ;;  %v407_v26 = vld [vmem:[%s1321_s17 + $0xa0] sm:$0xff]  ;;  %v409_v27 = vld [vmem:[%s1321_s17 + $0xb0] sm:$0xff]  ;;  %406 = vst [vmem:[%s326_s24 + $0x48] sm:$0xff] %v405_v25 }
  0x27   : > { %408 = vst [vmem:[%s326_s24 + $0x50] sm:$0xff] %v407_v26  ;;  %410 = vst [vmem:[%s326_s24 + $0x58] sm:$0xff] %v409_v27  ;;  %v411_v28 = vld [vmem:[%s1321_s17 + $0xc0] sm:$0xff]  ;;  %v413_v29 = vld [vmem:[%s1321_s17 + $0xd0] sm:$0xff] }
  0x28   : > { %v415_v30 = vld [vmem:[%s1321_s17 + $0xe0] sm:$0xff]  ;;  %412 = vst [vmem:[%s326_s24 + $0x60] sm:$0xff] %v411_v28  ;;  %414 = vst [vmem:[%s326_s24 + $0x68] sm:$0xff] %v413_v29  ;;  %v417_v31 = vld [vmem:[%s1321_s17 + $0xf0] sm:$0xff] }
  0x29   : > { %416 = vst [vmem:[%s326_s24 + $0x70] sm:$0xff] %v415_v30  ;;  %418 = vst [vmem:[%s326_s24 + $0x78] sm:$0xff] %v417_v31 }
  0x2a PF: > { %p1025_p8 = scmp.ge.s32.totalorder %s1209_s22, 1  ;;  %p431_p9 = scmp.lt.s32.totalorder %s1209_s22, 3 }
  0x2c   : > { %p432_p10 = pnand %p1025_p8, %p431_p9 }
  0x2d   : > { %s438_s25 = sand.u32 (!%p432_p10), 1, %s1193_s18   ;;  %v1211_v32 = vmov (!%p432_p10), 0   ;;  %v1169_v1 = vld [vmem:[%s1415_s2] sm:$0xff] (!%p432_p10)   ;;  %s1029_s10 = sshll.u32 (!%p432_p10), %s1201_s20, 1  ;;  %v807_v3 = vlaneseq (!%p432_p10) }
  0x2e   : > { %435 = sbr.rel (%p432_p10) target bundleno = 314 (0x13a), region = 108  ;;  %s1026_s26 = sshll.u32 (!%p432_p10), %s438_s25, 7  ;;  %665 = vmatprep.mubr.bf16.mxu1 (!%p432_p10), %v1211_v32  ;;  %794 = vmatprep.mubr.bf16.mxu0 (!%p432_p10), %v1211_v32  ;;  %v1170_v2 = vld [vmem:[%s1413_s0] sm:$0xff] (!%p432_p10)  }
  0x2f   : > { %s1344_s27 = scalar_lea.vmem (!%p432_p10), [#allocation3], %s1026_s26  ;;  %s1347_s30 = scalar_lea.vmem (!%p432_p10), [#allocation2], %s1026_s26  ;;  %v808_v4 = vshrl.u32 (!%p432_p10), %v807_v3, 7 }
  0x30   : > { %v1121_v33 = vld [vmem:[%s1344_s27 + $0x4] ss:$8 sps:$4 sm:$0xff] (!%p432_p10)   ;;  %v1125_v35 = vld [vmem:[%s1344_s27] ss:$8 sps:$4 sm:$0xff] (!%p432_p10)   ;;  %v1127_v37 = vld [vmem:[%s1344_s27 + $0x14] ss:$8 sps:$4 sm:$0xff] (!%p432_p10)  }
  0x31   : > { %v1123_v34 = vld [vmem:[%s1347_s30 + $0x4] ss:$8 sps:$4 sm:$0xff] (!%p432_p10)   ;;  %633 = vmatprep.subr.bf16.mxu1 (!%p432_p10), %v1121_v33  ;;  %v1126_v36 = vld [vmem:[%s1347_s30] ss:$8 sps:$4 sm:$0xff] (!%p432_p10)   ;;  %v1129_v38 = vld [vmem:[%s1347_s30 + $0x14] ss:$8 sps:$4 sm:$0xff] (!%p432_p10)  }
  0x32   : > { %762 = vmatprep.subr.bf16.mxu0 (!%p432_p10), %v1123_v34  ;;  %634 = vmatpush1.bf16.msra.mxu1 (!%p432_p10), %v1125_v35  ;;  %v1131_v39 = vld [vmem:[%s1344_s27 + $0x10] ss:$8 sps:$4 sm:$0xff] (!%p432_p10)   ;;  %v1133_v41 = vld [vmem:[%s1344_s27 + $0x24] ss:$8 sps:$4 sm:$0xff] (!%p432_p10)   ;;  %v1137_v43 = vld [vmem:[%s1344_s27 + $0x20] ss:$8 sps:$4 sm:$0xff] (!%p432_p10)  }
  0x33   : > { %763 = vmatpush1.bf16.msra.mxu0 (!%p432_p10), %v1126_v36  ;;  %635 = vmatprep.subr.bf16.mxu1 (!%p432_p10), %v1127_v37  ;;  %v1132_v40 = vld [vmem:[%s1347_s30 + $0x10] ss:$8 sps:$4 sm:$0xff] (!%p432_p10)   ;;  %v1135_v42 = vld [vmem:[%s1347_s30 + $0x24] ss:$8 sps:$4 sm:$0xff] (!%p432_p10)   ;;  %v1138_v44 = vld [vmem:[%s1347_s30 + $0x20] ss:$8 sps:$4 sm:$0xff] (!%p432_p10)  }
  0x34   : > { %764 = vmatprep.subr.bf16.mxu0 (!%p432_p10), %v1129_v38  ;;  %v1139_v45 = vld [vmem:[%s1344_s27 + $0x34] ss:$8 sps:$4 sm:$0xff] (!%p432_p10)   ;;  %v1143_v47 = vld [vmem:[%s1344_s27 + $0x30] ss:$8 sps:$4 sm:$0xff] (!%p432_p10)   ;;  %v1145_v49 = vld [vmem:[%s1344_s27 + $0x44] ss:$8 sps:$4 sm:$0xff] (!%p432_p10)  }
  0x35   : > { %v1141_v46 = vld [vmem:[%s1347_s30 + $0x34] ss:$8 sps:$4 sm:$0xff]   ;;  %v1144_v48 = vld [vmem:[%s1347_s30 + $0x30] ss:$8 sps:$4 sm:$0xff]   ;;  %v1147_v50 = vld [vmem:[%s1347_s30 + $0x44] ss:$8 sps:$4 sm:$0xff]  }
  0x36   : > { %636 = vmatpush1.bf16.msra.mxu1 %v1131_v39  ;;  %v1149_v51 = vld [vmem:[%s1344_s27 + $0x40] ss:$8 sps:$4 sm:$0xff]   ;;  %v1151_v53 = vld [vmem:[%s1344_s27 + $0x54] ss:$8 sps:$4 sm:$0xff]   ;;  %v1155_v55 = vld [vmem:[%s1344_s27 + $0x50] ss:$8 sps:$4 sm:$0xff]  }
  0x37   : > { %765 = vmatpush1.bf16.msra.mxu0 %v1132_v40  ;;  %637 = vmatprep.subr.bf16.mxu1 %v1133_v41  ;;  %v1150_v52 = vld [vmem:[%s1347_s30 + $0x40] ss:$8 sps:$4 sm:$0xff]   ;;  %v1153_v54 = vld [vmem:[%s1347_s30 + $0x54] ss:$8 sps:$4 sm:$0xff]   ;;  %v1156_v56 = vld [vmem:[%s1347_s30 + $0x50] ss:$8 sps:$4 sm:$0xff]  }
  0x38   : > { %766 = vmatprep.subr.bf16.mxu0 %v1135_v42  ;;  %v1157_v57 = vld [vmem:[%s1344_s27 + $0x64] ss:$8 sps:$4 sm:$0xff]   ;;  %v1161_v59 = vld [vmem:[%s1344_s27 + $0x60] ss:$8 sps:$4 sm:$0xff]   ;;  %v1163_v61 = vld [vmem:[%s1344_s27 + $0x74] ss:$8 sps:$4 sm:$0xff]  }
  0x39   : > { %v1159_v58 = vld [vmem:[%s1347_s30 + $0x64] ss:$8 sps:$4 sm:$0xff]   ;;  %v1162_v60 = vld [vmem:[%s1347_s30 + $0x60] ss:$8 sps:$4 sm:$0xff]   ;;  %v1165_v62 = vld [vmem:[%s1347_s30 + $0x74] ss:$8 sps:$4 sm:$0xff]  }
  0x3a   : > { %638 = vmatpush1.bf16.msra.mxu1 %v1137_v43  ;;  %v1167_v63 = vld [vmem:[%s1344_s27 + $0x70] ss:$8 sps:$4 sm:$0xff]   ;;  %p504_p11 = scmp.lt.s32.totalorder %s1029_s10, 3  ;;  %v809_v5 = vsub.s32 0, %v808_v4  ;;  %v813_v7 = vsub.s32 1, %v808_v4  ;;  %s1028_s14 = sshll.u32 %s438_s25, 4 }
  0x3b   : > { %767 = vmatpush1.bf16.msra.mxu0 %v1138_v44  ;;  %639 = vmatprep.subr.bf16.mxu1 %v1139_v45  ;;  %v1168_v0 = vld [vmem:[%s1347_s30 + $0x70] ss:$8 sps:$4 sm:$0xff]   ;;  %s488_s15 = scalar_lea.vmem [#allocation4], %s1028_s14  ;;  %s1075_s16 = sshll.u32 (%p1281_p6), %s1201_s20, 3 }
  0x3c   : > { %768 = vmatprep.subr.bf16.mxu0 %v1141_v46  ;;  %s1428_s10 = smov (!%p504_p11, %s1029_s10), 3  ;;  %s851_s24 = scalar_lea.vmem (%p1281_p6), %s1418_s5, %s1075_s16 }
  0x3d   : > { %s506_s13 = scalar_lea.vmem %s1417_s4, %s1428_s10 }
  0x3e   : > { %640 = vmatpush1.bf16.msra.mxu1 %v1143_v47  ;;  %v805_v6 = vld [vmem:[%s506_s13] sm:$0x3] }
  0x3f   : > { %769 = vmatpush1.bf16.msra.mxu0 %v1144_v48  ;;  %641 = vmatprep.subr.bf16.mxu1 %v1145_v49  ;;  %v810_v8 = vrot.slane %v805_v6, %v809_v5  ;;  %v814_v11 = vrot.slane %v805_v6, %v813_v7 }
  0x40   : > { %770 = vmatprep.subr.bf16.mxu0 %v1147_v50 }
  0x42   : > { %642 = vmatpush1.bf16.msra.mxu1 %v1149_v51 }
  0x43   : > { %771 = vmatpush1.bf16.msra.mxu0 %v1150_v52  ;;  %643 = vmatprep.subr.bf16.mxu1 %v1151_v53 }
  0x44   : > { %772 = vmatprep.subr.bf16.mxu0 %v1153_v54 }
  0x46   : > { %644 = vmatpush1.bf16.msra.mxu1 %v1155_v55 }
  0x47   : > { %773 = vmatpush1.bf16.msra.mxu0 %v1156_v56  ;;  %645 = vmatprep.subr.bf16.mxu1 %v1157_v57 }
  0x48   : > { %774 = vmatprep.subr.bf16.mxu0 %v1159_v58 }
  0x4a   : > { %646 = vmatpush1.bf16.msra.mxu1 %v1161_v59 }
  0x4b   : > { %775 = vmatpush1.bf16.msra.mxu0 %v1162_v60  ;;  %647 = vmatprep.subr.bf16.mxu1 %v1163_v61 }
  0x4c   : > { %776 = vmatprep.subr.bf16.mxu0 %v1165_v62 }
  0x4e   : > { %648 = vmatpush1.bf16.msra.mxu1 %v1167_v63 }
  0x4f   : > { %777 = vmatpush1.bf16.msra.mxu0 %v1168_v0 }
  0x51   : > { %666 = vmatmul.mubr.bf16.vlgmr.msra.gmra.mrb[0].mxu1 %v1169_v1 }
  0x52   : > { %795 = vmatmul.mubr.bf16.vlgmr.msra.gmra.mrb[0].mxu0 %v1170_v2 }
 0x124   : > { %v667_v9 = vpop.f32.mrb[0].mxu1 }
 0x125   : > { %v796_v10 = vpop.f32.mrb[0].mxu0  ;;  %v669_v13 = vpop.f32.mrb[1].mxu1 }
 0x126   : > { %v797_v12 = vadd.f32 %v796_v10, %v667_v9  ;;  %v798_v14 = vpop.f32.mrb[1].mxu0  ;;  %v671_v16 = vpop.f32.mrb[2].mxu1 }
 0x127   : > { %v799_v15 = vadd.f32 %v798_v14, %v669_v13  ;;  %v800_v17 = vpop.f32.mrb[2].mxu0  ;;  %v673_v20 = vpop.f32.mrb[3].mxu1 }
 0x128   : > { %v817_v18 = vadd.f32 %v810_v8, %v797_v12  ;;  %v801_v19 = vadd.f32 %v800_v17, %v671_v16  ;;  %v802_v21 = vpop.f32.mrb[3].mxu0 }
 0x129   : > { %v818_v22 = vadd.f32 %v814_v11, %v799_v15  ;;  %v803_v23 = vadd.f32 %v802_v21, %v673_v20 }
 0x12a   : > { %v821_v24 = vmax.f32 %v817_v18, 0.0  ;;  %v819_v25 = vadd.f32 %v810_v8, %v801_v19 }
 0x12b   : > { %v822_v26 = vmax.f32 %v818_v22, 0.0  ;;  %v820_v27 = vadd.f32 %v814_v11, %v803_v23  ;;  %845 = sbr.rel (!%p1281_p6) target bundleno = 314 (0x13a), region = 120 }
 0x12c   : > { %v823_v28 = vmax.f32 %v819_v25, 0.0 }
 0x12d   : > { %v1073_v29 = vpack.c.bf16 %v822_v26, %v821_v24  ;;  %v824_v30 = vmax.f32 %v820_v27, 0.0 }
 0x12f   : > { %837 = vst [vmem:[%s488_s15] sm:$0xff] %v1073_v29  ;;  %v1074_v31 = vpack.c.bf16 %v824_v30, %v823_v28 }
 0x131   : > { %838 = vst [vmem:[%s488_s15 + $0x8] sm:$0xff] %v1074_v31 }
 0x136   : > { %v881_v32 = vld [vmem:[%s488_s15] sm:$0xff] }
 0x137   : > { %882 = vst [vmem:[%s851_s24] sm:$0xff] %v881_v32 }
 0x138   : > { %v883_v33 = vld [vmem:[%s488_s15 + $0x8] sm:$0xff] }
 0x139   : > { %884 = vst [vmem:[%s851_s24 + $0x10] sm:$0xff] %v883_v33 }
 0x13a PF: > { %s15_s22 = sadd.s32 1, %s1209_s22   ;;  %s1421_s18 = smov %s1197_s19 }
 0x13b   : > { %p12_p12 = scmp.ge.s32.totalorder %s15_s22, 4   ;;  %s1422_s19 = smov %s1286_s29 }
 0x13c   : > { %s1423_s20 = smov %s1205_s21  ;;  %s1424_s21 = smov %s1426_s23 }
 0x13d   :  { %14 = sbr.rel (!%p12_p12) target bundleno = 3 (0x3), region = 206 }

// kernel: hetero_tcr_forward.47
= control target key start
LH: loop header
LB: loop body
LE: loop exit
PB: predicated region body
PF: predicated region fallthrough
CT: control target
= control target key end

     0   :  { %s371_s1 = inlined_call_operand.vmem [shape: bf16[256,128], index: 1, kind: input, shape index: {}]   ;;  %s372_s0 = inlined_call_operand.vmem [shape: bf16[16,256], index: 0, kind: input, shape index: {}]   ;;  %s373_s2 = inlined_call_operand.vmem [shape: f32[1,128], index: 2, kind: input, shape index: {}]   ;;  %s374_s3 = inlined_call_operand.vmem [shape: f32[16,128], index: 3, kind: output, shape index: {}]  }
   0x1   :  { %v269_v0 = vld [vmem:[%s371_s1 + $0x40] sm:$0xff]   ;;  %v271_v2 = vld [vmem:[%s371_s1 + $0x48] sm:$0xff]   ;;  %v273_v4 = vld [vmem:[%s371_s1 + $0x50] sm:$0xff]  }
   0x2   :  { %v270_v1 = vld [vmem:[%s371_s1] sm:$0xff]   ;;  %247 = vmatprep.subr.bf16.mxu0 %v269_v0  ;;  %v272_v3 = vld [vmem:[%s371_s1 + $0x8] sm:$0xff]   ;;  %v274_v5 = vld [vmem:[%s371_s1 + $0x10] sm:$0xff]  }
   0x3   :  { %248 = vmatpush3.bf16.msra.mxu0 %v270_v1  ;;  %v275_v6 = vld [vmem:[%s371_s1 + $0x58] sm:$0xff]   ;;  %v277_v8 = vld [vmem:[%s371_s1 + $0x60] sm:$0xff]   ;;  %v279_v10 = vld [vmem:[%s371_s1 + $0x68] sm:$0xff]  }
   0x4   :  { %249 = vmatprep.subr.bf16.mxu0 %v271_v2  ;;  %v276_v7 = vld [vmem:[%s371_s1 + $0x18] sm:$0xff]   ;;  %v278_v9 = vld [vmem:[%s371_s1 + $0x20] sm:$0xff]   ;;  %v280_v12 = vld [vmem:[%s371_s1 + $0x28] sm:$0xff]  }
   0x5   :  { %v287_v11 = vld [vmem:[%s372_s0 + $0x4] ss:$8 sps:$4 sm:$0xff]   ;;  %v281_v13 = vld [vmem:[%s371_s1 + $0x70] sm:$0xff]   ;;  %v283_v15 = vld [vmem:[%s371_s1 + $0x78] sm:$0xff]  }
   0x6   :  { %195 = vmatprep.mubr.bf16.mxu0 %v287_v11  ;;  %v282_v14 = vld [vmem:[%s371_s1 + $0x30] sm:$0xff]   ;;  %v284_v16 = vld [vmem:[%s371_s1 + $0x38] sm:$0xff]   ;;  %v285_v17 = vld [vmem:[%s372_s0] ss:$8 sps:$4 sm:$0xff]  }
   0x7   :  { %250 = vmatpush3.bf16.msra.mxu0 %v272_v3  ;;  %v246_v20 = vld [vmem:[%s373_s2] ss:$0 sm:$0xff] }
   0x8   :  { %251 = vmatprep.subr.bf16.mxu0 %v273_v4 }
   0xb   :  { %252 = vmatpush3.bf16.msra.mxu0 %v274_v5 }
   0xc   :  { %253 = vmatprep.subr.bf16.mxu0 %v275_v6 }
   0xf   :  { %254 = vmatpush3.bf16.msra.mxu0 %v276_v7 }
  0x10   :  { %255 = vmatprep.subr.bf16.mxu0 %v277_v8 }
  0x13   :  { %256 = vmatpush3.bf16.msra.mxu0 %v278_v9 }
  0x14   :  { %257 = vmatprep.subr.bf16.mxu0 %v279_v10 }
  0x17   :  { %258 = vmatpush3.bf16.msra.mxu0 %v280_v12 }
  0x18   :  { %259 = vmatprep.subr.bf16.mxu0 %v281_v13 }
  0x1b   :  { %260 = vmatpush3.bf16.msra.mxu0 %v282_v14 }
  0x1c   :  { %261 = vmatprep.subr.bf16.mxu0 %v283_v15 }
  0x1f   :  { %262 = vmatpush3.bf16.msra.mxu0 %v284_v16 }
  0x22   :  { %196 = vmatmul.mubr.bf16.vlgmr.msra.gmra.mrb[0].mxu0 %v285_v17 }
  0xf5   :  { %v263_v18 = vpop.f32.mrb[0].mxu0 }
  0xf6   :  { %v264_v19 = vpop.f32.mrb[1].mxu0 }
  0xf7   :  { %v265_v21 = vadd.f32 %v264_v19, %v263_v18  ;;  %v266_v22 = vpop.f32.mrb[2].mxu0 }
  0xf8   :  { %v267_v23 = vpop.f32.mrb[3].mxu0 }
  0xf9   :  { %v220_v24 = vadd.f32 %v265_v21, %v246_v20  ;;  %v268_v25 = vadd.f32 %v267_v23, %v266_v22 }
  0xfb   :  { %222 = vst [vmem:[%s374_s3] sm:$0xff] %v220_v24  ;;  %v221_v26 = vadd.f32 %v268_v25, %v246_v20 }
  0xfd   :  { %223 = vst [vmem:[%s374_s3 + $0x8] sm:$0xff] %v221_v26 }

// kernel: hetero_tcr_forward.46
= control target key start
LH: loop header
LB: loop body
LE: loop exit
PB: predicated region body
PF: predicated region fallthrough
CT: control target
= control target key end

     0   :  { %s984_s1 = inlined_call_operand.vmem [shape: bf16[512,256], index: 1, kind: input, shape index: {}]   ;;  %s985_s0 = inlined_call_operand.vmem [shape: bf16[16,512], index: 0, kind: input, shape index: {}]   ;;  %s986_s2 = inlined_call_operand.vmem [shape: f32[1,256], index: 2, kind: input, shape index: {}]   ;;  %s987_s3 = inlined_call_operand.vmem [shape: bf16[16,256], index: 3, kind: output, shape index: {}]  }
   0x1   :  { %v649_v0 = vld [vmem:[%s984_s1 + $0x4] ss:$8 sps:$4 sm:$0xff]   ;;  %v653_v2 = vld [vmem:[%s984_s1] ss:$8 sps:$4 sm:$0xff]   ;;  %v655_v4 = vld [vmem:[%s984_s1 + $0x14] ss:$8 sps:$4 sm:$0xff]  }
   0x2   :  { %v651_v1 = vld [vmem:[%s984_s1 + $0x104] ss:$8 sps:$4 sm:$0xff]   ;;  %434 = vmatprep.subr.bf16.mxu1 %v649_v0  ;;  %v654_v3 = vld [vmem:[%s984_s1 + $0x100] ss:$8 sps:$4 sm:$0xff]   ;;  %v657_v5 = vld [vmem:[%s984_s1 + $0x114] ss:$8 sps:$4 sm:$0xff]  }
   0x3   :  { %477 = vmatprep.subr.bf16.mxu0 %v651_v1  ;;  %435 = vmatpush1.bf16.msra.mxu1 %v653_v2  ;;  %v659_v6 = vld [vmem:[%s984_s1 + $0x10] ss:$8 sps:$4 sm:$0xff]   ;;  %v661_v8 = vld [vmem:[%s984_s1 + $0x24] ss:$8 sps:$4 sm:$0xff]   ;;  %v665_v10 = vld [vmem:[%s984_s1 + $0x20] ss:$8 sps:$4 sm:$0xff]  }
   0x4   :  { %478 = vmatpush1.bf16.msra.mxu0 %v654_v3  ;;  %436 = vmatprep.subr.bf16.mxu1 %v655_v4  ;;  %v660_v7 = vld [vmem:[%s984_s1 + $0x110] ss:$8 sps:$4 sm:$0xff]   ;;  %v663_v9 = vld [vmem:[%s984_s1 + $0x124] ss:$8 sps:$4 sm:$0xff]   ;;  %v666_v11 = vld [vmem:[%s984_s1 + $0x120] ss:$8 sps:$4 sm:$0xff]   ;;  %v537_v4 = vlaneseq }
   0x5   :  { %479 = vmatprep.subr.bf16.mxu0 %v657_v5  ;;  %v667_v12 = vld [vmem:[%s984_s1 + $0x34] ss:$8 sps:$4 sm:$0xff]   ;;  %v671_v14 = vld [vmem:[%s984_s1 + $0x30] ss:$8 sps:$4 sm:$0xff]   ;;  %v673_v16 = vld [vmem:[%s984_s1 + $0x44] ss:$8 sps:$4 sm:$0xff]  }
   0x6   :  { %v669_v13 = vld [vmem:[%s984_s1 + $0x134] ss:$8 sps:$4 sm:$0xff]   ;;  %v672_v15 = vld [vmem:[%s984_s1 + $0x130] ss:$8 sps:$4 sm:$0xff]   ;;  %v675_v17 = vld [vmem:[%s984_s1 + $0x144] ss:$8 sps:$4 sm:$0xff]  }
   0x7   :  { %437 = vmatpush1.bf16.msra.mxu1 %v659_v6  ;;  %v677_v18 = vld [vmem:[%s984_s1 + $0x40] ss:$8 sps:$4 sm:$0xff]   ;;  %v679_v20 = vld [vmem:[%s984_s1 + $0x54] ss:$8 sps:$4 sm:$0xff]   ;;  %v683_v22 = vld [vmem:[%s984_s1 + $0x50] ss:$8 sps:$4 sm:$0xff]  }
   0x8   :  { %480 = vmatpush1.bf16.msra.mxu0 %v660_v7  ;;  %438 = vmatprep.subr.bf16.mxu1 %v661_v8  ;;  %v678_v19 = vld [vmem:[%s984_s1 + $0x140] ss:$8 sps:$4 sm:$0xff]   ;;  %v681_v21 = vld [vmem:[%s984_s1 + $0x154] ss:$8 sps:$4 sm:$0xff]   ;;  %v684_v23 = vld [vmem:[%s984_s1 + $0x150] ss:$8 sps:$4 sm:$0xff]  }
   0x9   :  { %481 = vmatprep.subr.bf16.mxu0 %v663_v9  ;;  %v685_v24 = vld [vmem:[%s984_s1 + $0x64] ss:$8 sps:$4 sm:$0xff]   ;;  %v689_v26 = vld [vmem:[%s984_s1 + $0x60] ss:$8 sps:$4 sm:$0xff]   ;;  %v691_v28 = vld [vmem:[%s984_s1 + $0x74] ss:$8 sps:$4 sm:$0xff]  }
   0xa   :  { %v687_v25 = vld [vmem:[%s984_s1 + $0x164] ss:$8 sps:$4 sm:$0xff]   ;;  %v690_v27 = vld [vmem:[%s984_s1 + $0x160] ss:$8 sps:$4 sm:$0xff]   ;;  %v693_v29 = vld [vmem:[%s984_s1 + $0x174] ss:$8 sps:$4 sm:$0xff]  }
   0xb   :  { %439 = vmatpush1.bf16.msra.mxu1 %v665_v10  ;;  %v695_v30 = vld [vmem:[%s984_s1 + $0x70] ss:$8 sps:$4 sm:$0xff]   ;;  %v697_v32 = vld [vmem:[%s984_s1 + $0x84] ss:$8 sps:$4 sm:$0xff]   ;;  %v701_v34 = vld [vmem:[%s984_s1 + $0x80] ss:$8 sps:$4 sm:$0xff]  }
   0xc   :  { %482 = vmatpush1.bf16.msra.mxu0 %v666_v11  ;;  %440 = vmatprep.subr.bf16.mxu1 %v667_v12  ;;  %v696_v31 = vld [vmem:[%s984_s1 + $0x170] ss:$8 sps:$4 sm:$0xff]   ;;  %v699_v33 = vld [vmem:[%s984_s1 + $0x184] ss:$8 sps:$4 sm:$0xff]   ;;  %v702_v35 = vld [vmem:[%s984_s1 + $0x180] ss:$8 sps:$4 sm:$0xff]  }
   0xd   :  { %483 = vmatprep.subr.bf16.mxu0 %v669_v13  ;;  %v703_v36 = vld [vmem:[%s984_s1 + $0x94] ss:$8 sps:$4 sm:$0xff]   ;;  %v707_v38 = vld [vmem:[%s984_s1 + $0x90] ss:$8 sps:$4 sm:$0xff]   ;;  %v709_v40 = vld [vmem:[%s984_s1 + $0xa4] ss:$8 sps:$4 sm:$0xff]  }
   0xe   :  { %v705_v37 = vld [vmem:[%s984_s1 + $0x194] ss:$8 sps:$4 sm:$0xff]   ;;  %v708_v39 = vld [vmem:[%s984_s1 + $0x190] ss:$8 sps:$4 sm:$0xff]   ;;  %v711_v41 = vld [vmem:[%s984_s1 + $0x1a4] ss:$8 sps:$4 sm:$0xff]  }
   0xf   :  { %441 = vmatpush1.bf16.msra.mxu1 %v671_v14  ;;  %v713_v42 = vld [vmem:[%s984_s1 + $0xa0] ss:$8 sps:$4 sm:$0xff]   ;;  %v715_v44 = vld [vmem:[%s984_s1 + $0xb4] ss:$8 sps:$4 sm:$0xff]   ;;  %v719_v46 = vld [vmem:[%s984_s1 + $0xb0] ss:$8 sps:$4 sm:$0xff]  }
  0x10   :  { %484 = vmatpush1.bf16.msra.mxu0 %v672_v15  ;;  %442 = vmatprep.subr.bf16.mxu1 %v673_v16  ;;  %v714_v43 = vld [vmem:[%s984_s1 + $0x1a0] ss:$8 sps:$4 sm:$0xff]   ;;  %v717_v45 = vld [vmem:[%s984_s1 + $0x1b4] ss:$8 sps:$4 sm:$0xff]   ;;  %v720_v48 = vld [vmem:[%s984_s1 + $0x1b0] ss:$8 sps:$4 sm:$0xff]  }
  0x11   :  { %485 = vmatprep.subr.bf16.mxu0 %v675_v17  ;;  %v747_v47 = vld [vmem:[%s985_s0 + $0x4] ss:$16 sps:$4 sm:$0xff]   ;;  %v750_v51 = vld [vmem:[%s985_s0 + $0xc] ss:$16 sps:$4 sm:$0xff]   ;;  %v725_v52 = vld [vmem:[%s984_s1 + $0xc0] ss:$8 sps:$4 sm:$0xff]  }
  0x12   :  { %v721_v49 = vld [vmem:[%s984_s1 + $0xc4] ss:$8 sps:$4 sm:$0xff]   ;;  %466 = vmatprep.mubr.bf16.mxu1 %v747_v47  ;;  %509 = vmatprep.mubr.bf16.mxu0 %v750_v51  ;;  %v726_v53 = vld [vmem:[%s984_s1 + $0x1c0] ss:$8 sps:$4 sm:$0xff]   ;;  %v727_v54 = vld [vmem:[%s984_s1 + $0xd4] ss:$8 sps:$4 sm:$0xff]  }
  0x13   :  { %443 = vmatpush1.bf16.msra.mxu1 %v677_v18  ;;  %v723_v50 = vld [vmem:[%s984_s1 + $0x1c4] ss:$8 sps:$4 sm:$0xff]   ;;  %v729_v55 = vld [vmem:[%s984_s1 + $0x1d4] ss:$8 sps:$4 sm:$0xff]   ;;  %v731_v56 = vld [vmem:[%s984_s1 + $0xd0] ss:$8 sps:$4 sm:$0xff]  }
  0x14   :  { %486 = vmatpush1.bf16.msra.mxu0 %v678_v19  ;;  %444 = vmatprep.subr.bf16.mxu1 %v679_v20  ;;  %v732_v57 = vld [vmem:[%s984_s1 + $0x1d0] ss:$8 sps:$4 sm:$0xff]   ;;  %v733_v58 = vld [vmem:[%s984_s1 + $0xe4] ss:$8 sps:$4 sm:$0xff]   ;;  %v737_v60 = vld [vmem:[%s984_s1 + $0xe0] ss:$8 sps:$4 sm:$0xff]  }
  0x15   :  { %487 = vmatprep.subr.bf16.mxu0 %v681_v21  ;;  %v735_v59 = vld [vmem:[%s984_s1 + $0x1e4] ss:$8 sps:$4 sm:$0xff]   ;;  %v738_v61 = vld [vmem:[%s984_s1 + $0x1e0] ss:$8 sps:$4 sm:$0xff]   ;;  %v739_v62 = vld [vmem:[%s984_s1 + $0xf4] ss:$8 sps:$4 sm:$0xff]  }
  0x16   :  { %v741_v63 = vld [vmem:[%s984_s1 + $0x1f4] ss:$8 sps:$4 sm:$0xff]   ;;  %v743_v0 = vld [vmem:[%s984_s1 + $0xf0] ss:$8 sps:$4 sm:$0xff]   ;;  %v538_v5 = vshrl.u32 %v537_v4, 7 }
  0x17   :  { %445 = vmatpush1.bf16.msra.mxu1 %v683_v22  ;;  %v744_v1 = vld [vmem:[%s984_s1 + $0x1f0] ss:$8 sps:$4 sm:$0xff]   ;;  %v535_v7 = vld [vmem:[%s986_s2] sm:$0x3] }
  0x18   :  { %488 = vmatpush1.bf16.msra.mxu0 %v684_v23  ;;  %446 = vmatprep.subr.bf16.mxu1 %v685_v24  ;;  %v745_v2 = vld [vmem:[%s985_s0] ss:$16 sps:$4 sm:$0xff]   ;;  %v748_v3 = vld [vmem:[%s985_s0 + $0x8] ss:$16 sps:$4 sm:$0xff]   ;;  %v539_v6 = vsub.s32 0, %v538_v5  ;;  %v543_v8 = vsub.s32 1, %v538_v5 }
  0x19   :  { %489 = vmatprep.subr.bf16.mxu0 %v687_v25 }
  0x1a   :  { %v540_v9 = vrot.slane %v535_v7, %v539_v6  ;;  %v544_v12 = vrot.slane %v535_v7, %v543_v8 }
  0x1b   :  { %447 = vmatpush1.bf16.msra.mxu1 %v689_v26 }
  0x1c   :  { %490 = vmatpush1.bf16.msra.mxu0 %v690_v27  ;;  %448 = vmatprep.subr.bf16.mxu1 %v691_v28 }
  0x1d   :  { %491 = vmatprep.subr.bf16.mxu0 %v693_v29 }
  0x1f   :  { %449 = vmatpush1.bf16.msra.mxu1 %v695_v30 }
  0x20   :  { %492 = vmatpush1.bf16.msra.mxu0 %v696_v31  ;;  %450 = vmatprep.subr.bf16.mxu1 %v697_v32 }
  0x21   :  { %493 = vmatprep.subr.bf16.mxu0 %v699_v33 }
  0x23   :  { %451 = vmatpush1.bf16.msra.mxu1 %v701_v34 }
  0x24   :  { %494 = vmatpush1.bf16.msra.mxu0 %v702_v35  ;;  %452 = vmatprep.subr.bf16.mxu1 %v703_v36 }
  0x25   :  { %495 = vmatprep.subr.bf16.mxu0 %v705_v37 }
  0x27   :  { %453 = vmatpush1.bf16.msra.mxu1 %v707_v38 }
  0x28   :  { %496 = vmatpush1.bf16.msra.mxu0 %v708_v39  ;;  %454 = vmatprep.subr.bf16.mxu1 %v709_v40 }
  0x29   :  { %497 = vmatprep.subr.bf16.mxu0 %v711_v41 }
  0x2b   :  { %455 = vmatpush1.bf16.msra.mxu1 %v713_v42 }
  0x2c   :  { %498 = vmatpush1.bf16.msra.mxu0 %v714_v43  ;;  %456 = vmatprep.subr.bf16.mxu1 %v715_v44 }
  0x2d   :  { %499 = vmatprep.subr.bf16.mxu0 %v717_v45 }
  0x2f   :  { %457 = vmatpush1.bf16.msra.mxu1 %v719_v46 }
  0x30   :  { %500 = vmatpush1.bf16.msra.mxu0 %v720_v48  ;;  %458 = vmatprep.subr.bf16.mxu1 %v721_v49 }
  0x31   :  { %501 = vmatprep.subr.bf16.mxu0 %v723_v50 }
  0x33   :  { %459 = vmatpush1.bf16.msra.mxu1 %v725_v52 }
  0x34   :  { %502 = vmatpush1.bf16.msra.mxu0 %v726_v53  ;;  %460 = vmatprep.subr.bf16.mxu1 %v727_v54 }
  0x35   :  { %503 = vmatprep.subr.bf16.mxu0 %v729_v55 }
  0x37   :  { %461 = vmatpush1.bf16.msra.mxu1 %v731_v56 }
  0x38   :  { %504 = vmatpush1.bf16.msra.mxu0 %v732_v57  ;;  %462 = vmatprep.subr.bf16.mxu1 %v733_v58 }
  0x39   :  { %505 = vmatprep.subr.bf16.mxu0 %v735_v59 }
  0x3b   :  { %463 = vmatpush1.bf16.msra.mxu1 %v737_v60 }
  0x3c   :  { %506 = vmatpush1.bf16.msra.mxu0 %v738_v61  ;;  %464 = vmatprep.subr.bf16.mxu1 %v739_v62 }
  0x3d   :  { %507 = vmatprep.subr.bf16.mxu0 %v741_v63 }
  0x3f   :  { %465 = vmatpush1.bf16.msra.mxu1 %v743_v0 }
  0x40   :  { %508 = vmatpush1.bf16.msra.mxu0 %v744_v1 }
  0x42   :  { %467 = vmatmul.mubr.bf16.vlgmr.msra.gmra.mrb[0].mxu1 %v745_v2 }
  0x43   :  { %510 = vmatmul.mubr.bf16.vlgmr.msra.gmra.mrb[0].mxu0 %v748_v3 }
 0x115   :  { %v468_v10 = vpop.f32.mrb[0].mxu1 }
 0x116   :  { %v511_v11 = vpop.f32.mrb[0].mxu0  ;;  %v470_v14 = vpop.f32.mrb[1].mxu1 }
 0x117   :  { %v512_v13 = vadd.f32 %v511_v11, %v468_v10  ;;  %v513_v15 = vpop.f32.mrb[1].mxu0  ;;  %v472_v17 = vpop.f32.mrb[2].mxu1 }
 0x118   :  { %v514_v16 = vadd.f32 %v513_v15, %v470_v14  ;;  %v515_v18 = vpop.f32.mrb[2].mxu0  ;;  %v474_v21 = vpop.f32.mrb[3].mxu1 }
 0x119   :  { %v547_v19 = vadd.f32 %v540_v9, %v512_v13  ;;  %v516_v20 = vadd.f32 %v515_v18, %v472_v17  ;;  %v517_v22 = vpop.f32.mrb[3].mxu0 }
 0x11a   :  { %v548_v23 = vadd.f32 %v544_v12, %v514_v16  ;;  %v518_v24 = vadd.f32 %v517_v22, %v474_v21 }
 0x11b   :  { %v551_v25 = vmax.f32 %v547_v19, 0.0  ;;  %v549_v26 = vadd.f32 %v540_v9, %v516_v20 }
 0x11c   :  { %v552_v27 = vmax.f32 %v548_v23, 0.0  ;;  %v550_v28 = vadd.f32 %v544_v12, %v518_v24 }
 0x11d   :  { %v553_v29 = vmax.f32 %v549_v26, 0.0 }
 0x11e   :  { %v643_v30 = vpack.c.bf16 %v552_v27, %v551_v25  ;;  %v554_v31 = vmax.f32 %v550_v28, 0.0 }
 0x120   :  { %567 = vst [vmem:[%s987_s3] sm:$0xff] %v643_v30  ;;  %v644_v32 = vpack.c.bf16 %v554_v31, %v553_v29 }
 0x122   :  { %568 = vst [vmem:[%s987_s3 + $0x8] sm:$0xff] %v644_v32 }

</bundles_post_ra>
